<compile_context>
chip_gen: v5e
topology: v5e:2x2
jax: 0.10.0
libtpu: 0.0.40
codegen_flags: <defaults>
</compile_context>

<pallas_src>
import functools

import jax
import jax.numpy as jnp
import numpy as np
from jax import lax
from jax.experimental import pallas as pl
from jax.experimental.pallas import tpu as pltpu


def _tsn_fused_kernel(x_ref, wstem_t_ref, wfc_ref,
                      pred_ref, feat_ref, featn_ref,
                      *, n_seg, n_chan, hw, lane_chunk, pool_scale):
    """Grid = (B,).  Whole T axis lives in the body.

    Per batch element: for every frame t and lane chunk j, the stem stand-in
    (pointwise conv C->F + ReLU) is computed as C broadcast VPU FMAs producing
    an (F, L) tile (pixels on the lane axis straight out of NCHW) and added
    into a lane-dense running sum.  A single XLU lane-reduce + pool/consensus
    scale then yields the consensus feature, from which the bias-free fc and
    the L2-normalized feature are produced once per b.
    """
    wt = wstem_t_ref[...]                       # (F, C), tiny
    n_chunks = hw // lane_chunk

    # Lane-dense accumulator carried as a value (no scratch, no pl.when gates).
    acc = jnp.zeros((wt.shape[0], lane_chunk), jnp.float32)

    # T and the chunk count are small static ints -> fully unrolled loop
    # (equivalent to lax.fori_loop(..., unroll=True) at these trip counts).
    for t in range(n_seg):
        for j in range(n_chunks):
            x = x_ref[0, t, :, j * lane_chunk:(j + 1) * lane_chunk]   # (C, L)
            # Pointwise conv C->F as C broadcast FMAs on the VPU (avoids a
            # K=3 MXU contraction that would pad 3 -> 128/256 lanes).
            act = wt[:, 0:1] * x[0:1, :]                              # (F, L)
            for c in range(1, n_chan):
                act = act + wt[:, c:c + 1] * x[c:c + 1, :]
            act = jnp.maximum(act, 0.0)                               # ReLU
            acc = acc + act          # full-width VPU add; XLU reduce deferred

    # AdaptiveAvgPool2d(1) + avg consensus over T: one lane reduce + scale.
    # TODO(synk): at real HW (~50k pixels) scale by 1/HW per frame (or use
    # pairwise accumulation) to recover a few bits of the reference precision.
    feat_col = jnp.sum(acc, axis=1, keepdims=True) * pool_scale       # (F, 1)

    # Bias-free fc AFTER consensus (exact): one sublane reduce over F gives a
    # lane-dense (1, KP) prediction row.  No F x F identity block needed.
    pred_row = jnp.sum(feat_col * wfc_ref[...], axis=0, keepdims=True)  # (1, KP)
    pred_ref[0] = pred_row

    # Feature emitted as an (F, 1) column (written once per b; wrapper
    # reshapes (B, F, 1) -> (B, F) for free).
    feat_ref[0] = feat_col

    # Eval-mode branch: F.normalize(feature, dim=1), eps=1e-12 (rsqrt -> EUP).
    nsq = jnp.sum(feat_col * feat_col, axis=0, keepdims=True)         # (1, 1)
    inv_norm = jnp.minimum(lax.rsqrt(nsq), 1e12)                      # 1/max(||f||,1e-12)
    featn_ref[0] = feat_col * inv_norm


def tsn_forward(x, w_stem, w_fc, num_segments):
    """x: (B, T, C, H, W) float32 (PyTorch NCHW per frame)."""
    B, T, C, H, W = x.shape
    assert T == num_segments
    HW = H * W
    F = w_stem.shape[1]
    K = w_fc.shape[1]
    KP = ((K + 127) // 128) * 128            # lane-dense prediction slab

    # Lane chunking bounds the live (F, L) activation intermediate at real
    # frame sizes; at toy HW it is one chunk.
    # TODO(synk): handle HW not divisible by the chunk with a masked tail.
    LANE_CHUNK = 512
    lane_chunk = LANE_CHUNK if (HW > LANE_CHUNK and HW % LANE_CHUNK == 0) else HW

    # Free reshape of the contiguous NCHW input (no transpose, no extra HBM pass).
    x4 = x.reshape(B, T, C, HW)
    w_stem_t = jnp.transpose(w_stem)                                   # (F, C), tiny
    w_fc_pad = jnp.zeros((F, KP), w_fc.dtype).at[:, :K].set(w_fc)      # (F, KP)

    # TODO(synk): on v6e/v7x a bf16 stem compute (f32 accumulate) would ~2x the
    # VALU-bound inner loop at real HW; kept f32 here to match the f32 reference.
    kernel = functools.partial(
        _tsn_fused_kernel, n_seg=T, n_chan=C, hw=HW,
        lane_chunk=lane_chunk, pool_scale=1.0 / (T * HW))

    pred3, feat3, featn3 = pl.pallas_call(
        kernel,
        out_shape=(
            jax.ShapeDtypeStruct((B, 1, KP), jnp.float32),
            jax.ShapeDtypeStruct((B, F, 1), jnp.float32),
            jax.ShapeDtypeStruct((B, F, 1), jnp.float32),
        ),
        grid=(B,),
        in_specs=[
            pl.BlockSpec((1, T, C, HW), lambda b: (b, 0, 0, 0)),
            pl.BlockSpec((F, C), lambda b: (0, 0)),
            pl.BlockSpec((F, KP), lambda b: (0, 0)),
        ],
        out_specs=(
            pl.BlockSpec((1, 1, KP), lambda b: (b, 0, 0)),
            pl.BlockSpec((1, F, 1), lambda b: (b, 0, 0)),
            pl.BlockSpec((1, F, 1), lambda b: (b, 0, 0)),
        ),
        compiler_params=pltpu.CompilerParams(
            dimension_semantics=("parallel",)),
    )(x4, w_stem_t, w_fc_pad)

    predict = pred3[:, 0, :K]          # strip lane padding
    feature = feat3[:, :, 0]           # (B, F)
    feature_norm = featn3[:, :, 0]     # (B, F)
    return predict, feature, feature_norm


def reference(x, w_stem, w_fc):
    """Plain-JAX reference in the ORIGINAL PyTorch op order (fc per frame, then
    consensus) to validate that consensus-before-fc in the kernel is exact."""
    B, T, C, H, W = x.shape
    xt = jnp.transpose(x.reshape(B * T, C, H * W), (0, 2, 1))          # (BT, HW, C)
    fm = jnp.maximum(jnp.einsum("nsc,cf->nsf", xt, w_stem), 0.0)       # (BT, HW, F)
    pooled = jnp.mean(fm, axis=1)                                      # (BT, F)
    pred = pooled @ w_fc                                               # (BT, K)
    pooled = pooled.reshape(B, T, -1)
    pred = pred.reshape(B, T, -1)
    pred_c = jnp.mean(pred, axis=1)                                    # consensus
    feat_c = jnp.mean(pooled, axis=1)
    feat_n = feat_c / jnp.maximum(
        jnp.sqrt(jnp.sum(feat_c * feat_c, axis=1, keepdims=True)), 1e-12)
    return pred_c, feat_c, feat_n


if __name__ == "__main__":
    # Small shapes consistent with the TSN forward: (B, T=num_segments, C=3, H, W)
    B, T, C, H, W = 2, 4, 3, 8, 8
    NUM_FEATURES = 128          # stands in for ResNet's 2048
    NUM_CLASSES = 16

    key = jax.random.PRNGKey(0)
    kx, kw1, kw2 = jax.random.split(key, 3)

    x = jax.random.normal(kx, (B, T, C, H, W), dtype=jnp.float32)
    # stand-in backbone weight (deterministic init)
    w_stem = jax.random.normal(kw1, (C, NUM_FEATURES), dtype=jnp.float32) * 0.1
    # fc init matches normal_(self.fc.weight, 0, 0.001), bias=False
    w_fc = jax.random.normal(kw2, (NUM_FEATURES, NUM_CLASSES), dtype=jnp.float32) * 0.001

    pred, feat, feat_norm = tsn_forward(x, w_stem, w_fc, num_segments=T)
    jax.block_until_ready((pred, feat, feat_norm))

    pred_r, feat_r, feat_norm_r = reference(x, w_stem, w_fc)
    np.testing.assert_allclose(np.asarray(pred), np.asarray(pred_r), rtol=1e-5, atol=1e-5)
    np.testing.assert_allclose(np.asarray(feat), np.asarray(feat_r), rtol=1e-5, atol=1e-5)
    np.testing.assert_allclose(np.asarray(feat_norm), np.asarray(feat_norm_r),
                               rtol=1e-5, atol=1e-5)

    print("KERNEL_OK")
</pallas_src>

<mosaic_0001>
module attributes {stable_mosaic.version = 11 : i64} {
  func.func @_tsn_fused_kernel(%arg0: i32, %arg1: memref<1x4x3x64xf32, #tpu.memory_space<vmem>>, %arg2: memref<128x3xf32, #tpu.memory_space<vmem>>, %arg3: memref<128x128xf32, #tpu.memory_space<vmem>>, %arg4: memref<1x1x128xf32, #tpu.memory_space<vmem>>, %arg5: memref<1x128x1xf32, #tpu.memory_space<vmem>>, %arg6: memref<1x128x1xf32, #tpu.memory_space<vmem>>) attributes {dimension_semantics = [#tpu.dimension_semantics<parallel>], iteration_bounds = array<i64: 2>, scalar_prefetch = 0 : i64, scratch_operands = 0 : i64, tpu.core_type = #tpu.core_type<tc>, window_params = [{transform_indices = @transform_0, window_bounds = array<i64: 1, 4, 3, 64>}, {pipeline_mode = #tpu.pipeline_mode<synchronous>, transform_indices = @transform_1, window_bounds = array<i64: 128, 3>}, {pipeline_mode = #tpu.pipeline_mode<synchronous>, transform_indices = @transform_2, window_bounds = array<i64: 128, 128>}, {transform_indices = @transform_3, window_bounds = array<i64: 1, 1, 128>}, {transform_indices = @transform_4, window_bounds = array<i64: 1, 128, 1>}, {transform_indices = @transform_5, window_bounds = array<i64: 1, 128, 1>}]} {
    %c0 = arith.constant 0 : index
    %c0_0 = arith.constant 0 : index
    %0 = vector.load %arg2[%c0, %c0_0] : memref<128x3xf32, #tpu.memory_space<vmem>>, vector<128x3xf32>
    %cst = arith.constant 0.000000e+00 : f32
    %1 = vector.broadcast %cst : f32 to vector<128x64xf32>
    %c0_1 = arith.constant 0 : index
    %c0_2 = arith.constant 0 : index
    %c0_3 = arith.constant 0 : index
    %c0_4 = arith.constant 0 : index
    %2 = vector.load %arg1[%c0_1, %c0_2, %c0_3, %c0_4] : memref<1x4x3x64xf32, #tpu.memory_space<vmem>>, vector<1x1x3x64xf32>
    %3 = vector.shape_cast %2 : vector<1x1x3x64xf32> to vector<3x64xf32>
    %4 = vector.extract_strided_slice %0 {offsets = [0, 0], sizes = [128, 1], strides = [1, 1]} : vector<128x3xf32> to vector<128x1xf32>
    %5 = vector.extract_strided_slice %3 {offsets = [0, 0], sizes = [1, 64], strides = [1, 1]} : vector<3x64xf32> to vector<1x64xf32>
    %6 = vector.broadcast %4 : vector<128x1xf32> to vector<128x64xf32>
    %7 = vector.broadcast %5 : vector<1x64xf32> to vector<128x64xf32>
    %8 = arith.mulf %6, %7 : vector<128x64xf32>
    %9 = vector.extract_strided_slice %0 {offsets = [0, 1], sizes = [128, 1], strides = [1, 1]} : vector<128x3xf32> to vector<128x1xf32>
    %10 = vector.extract_strided_slice %3 {offsets = [1, 0], sizes = [1, 64], strides = [1, 1]} : vector<3x64xf32> to vector<1x64xf32>
    %11 = vector.broadcast %9 : vector<128x1xf32> to vector<128x64xf32>
    %12 = vector.broadcast %10 : vector<1x64xf32> to vector<128x64xf32>
    %13 = arith.mulf %11, %12 : vector<128x64xf32>
    %14 = arith.addf %8, %13 : vector<128x64xf32>
    %15 = vector.extract_strided_slice %0 {offsets = [0, 2], sizes = [128, 1], strides = [1, 1]} : vector<128x3xf32> to vector<128x1xf32>
    %16 = vector.extract_strided_slice %3 {offsets = [2, 0], sizes = [1, 64], strides = [1, 1]} : vector<3x64xf32> to vector<1x64xf32>
    %17 = vector.broadcast %15 : vector<128x1xf32> to vector<128x64xf32>
    %18 = vector.broadcast %16 : vector<1x64xf32> to vector<128x64xf32>
    %19 = arith.mulf %17, %18 : vector<128x64xf32>
    %20 = arith.addf %14, %19 : vector<128x64xf32>
    %cst_5 = arith.constant 0.000000e+00 : f32
    %21 = vector.broadcast %cst_5 : f32 to vector<128x64xf32>
    %22 = arith.maximumf %20, %21 : vector<128x64xf32>
    %23 = arith.addf %1, %22 : vector<128x64xf32>
    %c0_6 = arith.constant 0 : index
    %c1 = arith.constant 1 : index
    %c0_7 = arith.constant 0 : index
    %c0_8 = arith.constant 0 : index
    %24 = vector.load %arg1[%c0_6, %c1, %c0_7, %c0_8] : memref<1x4x3x64xf32, #tpu.memory_space<vmem>>, vector<1x1x3x64xf32>
    %25 = vector.shape_cast %24 : vector<1x1x3x64xf32> to vector<3x64xf32>
    %26 = vector.extract_strided_slice %0 {offsets = [0, 0], sizes = [128, 1], strides = [1, 1]} : vector<128x3xf32> to vector<128x1xf32>
    %27 = vector.extract_strided_slice %25 {offsets = [0, 0], sizes = [1, 64], strides = [1, 1]} : vector<3x64xf32> to vector<1x64xf32>
    %28 = vector.broadcast %26 : vector<128x1xf32> to vector<128x64xf32>
    %29 = vector.broadcast %27 : vector<1x64xf32> to vector<128x64xf32>
    %30 = arith.mulf %28, %29 : vector<128x64xf32>
    %31 = vector.extract_strided_slice %0 {offsets = [0, 1], sizes = [128, 1], strides = [1, 1]} : vector<128x3xf32> to vector<128x1xf32>
    %32 = vector.extract_strided_slice %25 {offsets = [1, 0], sizes = [1, 64], strides = [1, 1]} : vector<3x64xf32> to vector<1x64xf32>
    %33 = vector.broadcast %31 : vector<128x1xf32> to vector<128x64xf32>
    %34 = vector.broadcast %32 : vector<1x64xf32> to vector<128x64xf32>
    %35 = arith.mulf %33, %34 : vector<128x64xf32>
    %36 = arith.addf %30, %35 : vector<128x64xf32>
    %37 = vector.extract_strided_slice %0 {offsets = [0, 2], sizes = [128, 1], strides = [1, 1]} : vector<128x3xf32> to vector<128x1xf32>
    %38 = vector.extract_strided_slice %25 {offsets = [2, 0], sizes = [1, 64], strides = [1, 1]} : vector<3x64xf32> to vector<1x64xf32>
    %39 = vector.broadcast %37 : vector<128x1xf32> to vector<128x64xf32>
    %40 = vector.broadcast %38 : vector<1x64xf32> to vector<128x64xf32>
    %41 = arith.mulf %39, %40 : vector<128x64xf32>
    %42 = arith.addf %36, %41 : vector<128x64xf32>
    %cst_9 = arith.constant 0.000000e+00 : f32
    %43 = vector.broadcast %cst_9 : f32 to vector<128x64xf32>
    %44 = arith.maximumf %42, %43 : vector<128x64xf32>
    %45 = arith.addf %23, %44 : vector<128x64xf32>
    %c0_10 = arith.constant 0 : index
    %c2 = arith.constant 2 : index
    %c0_11 = arith.constant 0 : index
    %c0_12 = arith.constant 0 : index
    %46 = vector.load %arg1[%c0_10, %c2, %c0_11, %c0_12] : memref<1x4x3x64xf32, #tpu.memory_space<vmem>>, vector<1x1x3x64xf32>
    %47 = vector.shape_cast %46 : vector<1x1x3x64xf32> to vector<3x64xf32>
    %48 = vector.extract_strided_slice %0 {offsets = [0, 0], sizes = [128, 1], strides = [1, 1]} : vector<128x3xf32> to vector<128x1xf32>
    %49 = vector.extract_strided_slice %47 {offsets = [0, 0], sizes = [1, 64], strides = [1, 1]} : vector<3x64xf32> to vector<1x64xf32>
    %50 = vector.broadcast %48 : vector<128x1xf32> to vector<128x64xf32>
    %51 = vector.broadcast %49 : vector<1x64xf32> to vector<128x64xf32>
    %52 = arith.mulf %50, %51 : vector<128x64xf32>
    %53 = vector.extract_strided_slice %0 {offsets = [0, 1], sizes = [128, 1], strides = [1, 1]} : vector<128x3xf32> to vector<128x1xf32>
    %54 = vector.extract_strided_slice %47 {offsets = [1, 0], sizes = [1, 64], strides = [1, 1]} : vector<3x64xf32> to vector<1x64xf32>
    %55 = vector.broadcast %53 : vector<128x1xf32> to vector<128x64xf32>
    %56 = vector.broadcast %54 : vector<1x64xf32> to vector<128x64xf32>
    %57 = arith.mulf %55, %56 : vector<128x64xf32>
    %58 = arith.addf %52, %57 : vector<128x64xf32>
    %59 = vector.extract_strided_slice %0 {offsets = [0, 2], sizes = [128, 1], strides = [1, 1]} : vector<128x3xf32> to vector<128x1xf32>
    %60 = vector.extract_strided_slice %47 {offsets = [2, 0], sizes = [1, 64], strides = [1, 1]} : vector<3x64xf32> to vector<1x64xf32>
    %61 = vector.broadcast %59 : vector<128x1xf32> to vector<128x64xf32>
    %62 = vector.broadcast %60 : vector<1x64xf32> to vector<128x64xf32>
    %63 = arith.mulf %61, %62 : vector<128x64xf32>
    %64 = arith.addf %58, %63 : vector<128x64xf32>
    %cst_13 = arith.constant 0.000000e+00 : f32
    %65 = vector.broadcast %cst_13 : f32 to vector<128x64xf32>
    %66 = arith.maximumf %64, %65 : vector<128x64xf32>
    %67 = arith.addf %45, %66 : vector<128x64xf32>
    %c0_14 = arith.constant 0 : index
    %c3 = arith.constant 3 : index
    %c0_15 = arith.constant 0 : index
    %c0_16 = arith.constant 0 : index
    %68 = vector.load %arg1[%c0_14, %c3, %c0_15, %c0_16] : memref<1x4x3x64xf32, #tpu.memory_space<vmem>>, vector<1x1x3x64xf32>
    %69 = vector.shape_cast %68 : vector<1x1x3x64xf32> to vector<3x64xf32>
    %70 = vector.extract_strided_slice %0 {offsets = [0, 0], sizes = [128, 1], strides = [1, 1]} : vector<128x3xf32> to vector<128x1xf32>
    %71 = vector.extract_strided_slice %69 {offsets = [0, 0], sizes = [1, 64], strides = [1, 1]} : vector<3x64xf32> to vector<1x64xf32>
    %72 = vector.broadcast %70 : vector<128x1xf32> to vector<128x64xf32>
    %73 = vector.broadcast %71 : vector<1x64xf32> to vector<128x64xf32>
    %74 = arith.mulf %72, %73 : vector<128x64xf32>
    %75 = vector.extract_strided_slice %0 {offsets = [0, 1], sizes = [128, 1], strides = [1, 1]} : vector<128x3xf32> to vector<128x1xf32>
    %76 = vector.extract_strided_slice %69 {offsets = [1, 0], sizes = [1, 64], strides = [1, 1]} : vector<3x64xf32> to vector<1x64xf32>
    %77 = vector.broadcast %75 : vector<128x1xf32> to vector<128x64xf32>
    %78 = vector.broadcast %76 : vector<1x64xf32> to vector<128x64xf32>
    %79 = arith.mulf %77, %78 : vector<128x64xf32>
    %80 = arith.addf %74, %79 : vector<128x64xf32>
    %81 = vector.extract_strided_slice %0 {offsets = [0, 2], sizes = [128, 1], strides = [1, 1]} : vector<128x3xf32> to vector<128x1xf32>
    %82 = vector.extract_strided_slice %69 {offsets = [2, 0], sizes = [1, 64], strides = [1, 1]} : vector<3x64xf32> to vector<1x64xf32>
    %83 = vector.broadcast %81 : vector<128x1xf32> to vector<128x64xf32>
    %84 = vector.broadcast %82 : vector<1x64xf32> to vector<128x64xf32>
    %85 = arith.mulf %83, %84 : vector<128x64xf32>
    %86 = arith.addf %80, %85 : vector<128x64xf32>
    %cst_17 = arith.constant 0.000000e+00 : f32
    %87 = vector.broadcast %cst_17 : f32 to vector<128x64xf32>
    %88 = arith.maximumf %86, %87 : vector<128x64xf32>
    %89 = arith.addf %67, %88 : vector<128x64xf32>
    %cst_18 = arith.constant dense<0.000000e+00> : vector<128xf32>
    %90 = vector.multi_reduction <add>, %89, %cst_18 [1] : vector<128x64xf32> to vector<128xf32>
    %91 = vector.shape_cast %90 : vector<128xf32> to vector<128x1xf32>
    %cst_19 = arith.constant 3.906250e-03 : f32
    %92 = vector.broadcast %cst_19 : f32 to vector<128x1xf32>
    %93 = arith.mulf %91, %92 : vector<128x1xf32>
    %c0_20 = arith.constant 0 : index
    %c0_21 = arith.constant 0 : index
    %94 = vector.load %arg3[%c0_20, %c0_21] : memref<128x128xf32, #tpu.memory_space<vmem>>, vector<128x128xf32>
    %95 = vector.broadcast %93 : vector<128x1xf32> to vector<128x128xf32>
    %96 = arith.mulf %95, %94 : vector<128x128xf32>
    %cst_22 = arith.constant dense<0.000000e+00> : vector<128xf32>
    %97 = vector.multi_reduction <add>, %96, %cst_22 [0] : vector<128x128xf32> to vector<128xf32>
    %98 = vector.shape_cast %97 : vector<128xf32> to vector<1x128xf32>
    %c0_23 = arith.constant 0 : index
    %c0_24 = arith.constant 0 : index
    %c0_25 = arith.constant 0 : index
    %99 = vector.load %arg4[%c0_23, %c0_24, %c0_25] : memref<1x1x128xf32, #tpu.memory_space<vmem>>, vector<1x1x128xf32>
    %100 = vector.shape_cast %99 : vector<1x1x128xf32> to vector<1x128xf32>
    %101 = vector.shape_cast %98 : vector<1x128xf32> to vector<1x1x128xf32>
    tpu.vector_store %arg4[%c0_23, %c0_24, %c0_25], %101 {strides = array<i32>} : memref<1x1x128xf32, #tpu.memory_space<vmem>>, vector<1x1x128xf32>,
    %c0_26 = arith.constant 0 : index
    %c0_27 = arith.constant 0 : index
    %c0_28 = arith.constant 0 : index
    %102 = vector.load %arg5[%c0_26, %c0_27, %c0_28] : memref<1x128x1xf32, #tpu.memory_space<vmem>>, vector<1x128x1xf32>
    %103 = vector.shape_cast %102 : vector<1x128x1xf32> to vector<128x1xf32>
    %104 = vector.shape_cast %93 : vector<128x1xf32> to vector<1x128x1xf32>
    tpu.vector_store %arg5[%c0_26, %c0_27, %c0_28], %104 {strides = array<i32>} : memref<1x128x1xf32, #tpu.memory_space<vmem>>, vector<1x128x1xf32>,
    %105 = arith.mulf %93, %93 : vector<128x1xf32>
    %cst_29 = arith.constant dense<0.000000e+00> : vector<1xf32>
    %106 = vector.multi_reduction <add>, %105, %cst_29 [0] : vector<128x1xf32> to vector<1xf32>
    %107 = vector.shape_cast %106 : vector<1xf32> to vector<1x1xf32>
    %108 = math.rsqrt %107 : vector<1x1xf32>
    %cst_30 = arith.constant 9.99999995E+11 : f32
    %109 = vector.broadcast %cst_30 : f32 to vector<1x1xf32>
    %110 = arith.minimumf %108, %109 : vector<1x1xf32>
    %111 = vector.broadcast %110 : vector<1x1xf32> to vector<128x1xf32>
    %112 = arith.mulf %93, %111 : vector<128x1xf32>
    %c0_31 = arith.constant 0 : index
    %c0_32 = arith.constant 0 : index
    %c0_33 = arith.constant 0 : index
    %113 = vector.load %arg6[%c0_31, %c0_32, %c0_33] : memref<1x128x1xf32, #tpu.memory_space<vmem>>, vector<1x128x1xf32>
    %114 = vector.shape_cast %113 : vector<1x128x1xf32> to vector<128x1xf32>
    %115 = vector.shape_cast %112 : vector<128x1xf32> to vector<1x128x1xf32>
    tpu.vector_store %arg6[%c0_31, %c0_32, %c0_33], %115 {strides = array<i32>} : memref<1x128x1xf32, #tpu.memory_space<vmem>>, vector<1x128x1xf32>,
    return
  }
  func.func @transform_0(%arg0: i32) -> (i32, i32, i32, i32) {
    %c0_i32 = arith.constant 0 : i32
    %c0_i32_0 = arith.constant 0 : i32
    %c0_i32_1 = arith.constant 0 : i32
    %c0_i32_2 = arith.constant 0 : i32
    return %arg0, %c0_i32, %c0_i32_0, %c0_i32_1 : i32, i32, i32, i32
  }
  func.func @transform_1(%arg0: i32) -> (i32, i32) {
    %c0_i32 = arith.constant 0 : i32
    %c0_i32_0 = arith.constant 0 : i32
    %c0_i32_1 = arith.constant 0 : i32
    return %c0_i32, %c0_i32_0 : i32, i32
  }
  func.func @transform_2(%arg0: i32) -> (i32, i32) {
    %c0_i32 = arith.constant 0 : i32
    %c0_i32_0 = arith.constant 0 : i32
    %c0_i32_1 = arith.constant 0 : i32
    return %c0_i32, %c0_i32_0 : i32, i32
  }
  func.func @transform_3(%arg0: i32) -> (i32, i32, i32) {
    %c0_i32 = arith.constant 0 : i32
    %c0_i32_0 = arith.constant 0 : i32
    %c0_i32_1 = arith.constant 0 : i32
    return %arg0, %c0_i32, %c0_i32_0 : i32, i32, i32
  }
  func.func @transform_4(%arg0: i32) -> (i32, i32, i32) {
    %c0_i32 = arith.constant 0 : i32
    %c0_i32_0 = arith.constant 0 : i32
    %c0_i32_1 = arith.constant 0 : i32
    return %arg0, %c0_i32, %c0_i32_0 : i32, i32, i32
  }
  func.func @transform_5(%arg0: i32) -> (i32, i32, i32) {
    %c0_i32 = arith.constant 0 : i32
    %c0_i32_0 = arith.constant 0 : i32
    %c0_i32_1 = arith.constant 0 : i32
    return %arg0, %c0_i32, %c0_i32_0 : i32, i32, i32
  }
}

</mosaic_0001>

<bundles_post_ra>
// kernel: tpu_custom_call.1
= control target key start
LH: loop header
LB: loop body
LE: loop exit
PB: predicated region body
PF: predicated region fallthrough
CT: control target
= control target key end

     0   :  { %11 = vsyncpa [#allocation3], 0  ;;  %s2543_s0 = inlined_call_operand.vmem [shape: f32[2,4,3,64], index: 0, kind: input, shape index: {}]   ;;  %s2544_s1 = inlined_call_operand.vmem [shape: f32[128,3], index: 1, kind: input, shape index: {}]   ;;  %s2545_s2 = inlined_call_operand.vmem [shape: f32[128,128], index: 2, kind: input, shape index: {}]   ;;  %s2546_s3 = inlined_call_operand.hbm [shape: f32[2,1,128], index: 3, kind: output, shape index: {0}]   ;;  %s2547_s4 = inlined_call_operand.vmem [shape: f32[2,128,1], index: 4, kind: output, shape index: {1}]   ;;  %s2548_s5 = inlined_call_operand.vmem [shape: f32[2,128,1], index: 5, kind: output, shape index: {2}]  }
   0x1   :  { %13 = vsyncpa [#allocation3 + $0x1], 0  ;;  %s1456_s18 = smov 0   ;;  %s1458_s19 = smov 0  }
   0x2   :  { %s1460_s20 = smov 0   ;;  %s1462_s21 = smov 0  }
   0x3 LB: > { %s1477_s22 = sadd.s32 4294967295, %s1421_s21   ;;  %s1288_s23 = sadd.s32 4294967294, %s1421_s21   ;;  %s1421_s21 = sphi %s1462_s21, %s2646_s21   ;;  %s1417_s20 = sphi %s1460_s20, %s2645_s20   ;;  %s1413_s19 = sphi %s1458_s19, %s2644_s19   ;;  %s1409_s18 = sphi %s1456_s18, %s2643_s18  }
   0x4   : > { %s1481_s24 = sadd.s32 1, %s1421_s21   ;;  %s94_s25 = sadd.s32 1, %s1417_s20 }
   0x5   : > { %s91_s26 = ssub.s32 %s1421_s21, %s1481_s24  ;;  %p104_p0 = scmp.ne.s32.totalorder %s1417_s20, %s1413_s19 }
   0x6   : > { %p92_p1 = scmp.eq.s32.totalorder %s91_s26, 0  ;;  %p105_p2 = scmp.eq.s32.totalorder %s1477_s22, 1 }
   0x7   : > { %p110_p3 = scmp.ne.s32.totalorder %s1413_s19, %s1409_s18  ;;  %p111_p4 = scmp.eq.s32.totalorder %s1288_s23, 1 }
   0x8   : > { %s1492_s27 = scalar_select %p92_p1, %s1417_s20, %s94_s25  }
   0x9   : > { %p1494_p5 = por %p105_p2, %p104_p0  ;;  %p1498_p6 = por %p111_p4, %p110_p3 }
   0xa   : > { %p1291_p7 = scmp.ge.s32.totalorder %s1421_s21, 1  ;;  %p195_p8 = scmp.lt.s32.totalorder %s1421_s21, 3 }
   0xc   : > { %p196_p9 = pnand %p1291_p7, %p195_p8 }
   0xe   : > { %199 = sbr.rel (%p196_p9) target bundleno = 465 (0x1d1), region = 32 }
  0x13   : > { %v1507_v0 = vld [vmem:[%s2544_s1 + $0x20] sm:$0xff]  ;;  %v249_v1 = vld [vmem:[%s2544_s1 + $0x10] sm:$0xff]  ;;  %v1423_v3 = vmov 0   ;;  %v252_v4 = vld [vmem:[%s2544_s1 + $0x28] sm:$0xff]  ;;  %v1424_v17 = vmov 1   ;;  %v1425_v18 = vmov 2   ;;  %s1173_s7 = scalar_lea.hbm %s2546_s3, %s1477_s22 }
  0x14   : > { %v247_v2 = vld [vmem:[%s2544_s1] sm:$0xff]  ;;  %1350 = vset.pattern.permute.xlu2 %v1423_v3  ;;  %1349 = vset.pattern.permute.xlu1 %v1423_v3  ;;  %v250_v5 = vld [vmem:[%s2544_s1 + $0x18] sm:$0xff]  ;;  %v248_v6 = vld [vmem:[%s2544_s1 + $0x8] sm:$0xff]  ;;  %p232_p10 = scmp.lt.s32.totalorder %s1477_s22, 1  ;;  %vm938_vm0 = vcmask 523264   ;;  %vm1057_vm1 = vcmask 7168  }
  0x15   : > { %1348 = vset.pattern.permute.xlu0 %v1423_v3  ;;  %286 = vperm.xlu2 %1350, %v1507_v0   ;;  %v255_v7 = vld [vmem:[%s2544_s1 + $0x40] sm:$0xff]  ;;  %v254_v8 = vld [vmem:[%s2544_s1 + $0x38] sm:$0xff]  ;;  %v253_v9 = vld [vmem:[%s2544_s1 + $0x30] sm:$0xff]  ;;  %s216_s25 = sand.u32 1, %s1413_s19  }
  0x16   : > { %276 = vperm.xlu1 %1349, %v249_v1   ;;  %266 = vperm.xlu0 %1348, %v247_v2   ;;  %v258_v10 = vld [vmem:[%s2544_s1 + $0x58] sm:$0xff]  ;;  %v257_v11 = vld [vmem:[%s2544_s1 + $0x50] sm:$0xff]  ;;  %v256_v12 = vld [vmem:[%s2544_s1 + $0x48] sm:$0xff]  ;;  %s1573_s30 = scalar_select %p232_p10, %s1477_s22, 1 }
  0x17   : > { %v261_v13 = vld [vmem:[%s2544_s1 + $0x70] sm:$0xff]  ;;  %v260_v14 = vld [vmem:[%s2544_s1 + $0x68] sm:$0xff]  ;;  %v259_v15 = vld [vmem:[%s2544_s1 + $0x60] sm:$0xff]  ;;  %s217_s8 = scalar_lea.vmem [#allocation2], %s216_s25  ;;  %s1155_s14 = scalar_lea.sflag [#allocation3], %s216_s25 }
  0x18   : > { %v1555_v16 = vld [vmem:[%s2544_s1 + $0x78] sm:$0xff]  ;;  %s1303_s6 = sshll.u32 %s1573_s30, 4  ;;  %s1304_s10 = sshll.u32 %s1573_s30, 7 }
  0x19   : > { %s236_s9 = scalar_lea.vmem %s2543_s0, %s1303_s6  ;;  %s2275_s13 = scalar_lea.vmem %s2547_s4, %s1304_s10 }
  0x1a   : > { %v1583_v28 = vld [vmem:[%s236_s9] sm:$0x7]  ;;  %v1585_v29 = vld [vmem:[%s236_s9 + $0x4] sm:$0x7]  ;;  %v1587_v30 = vld [vmem:[%s236_s9 + $0x8] sm:$0x7]  ;;  %s2466_s12 = scalar_lea.vmem %s2548_s5, %s1304_s10 }
  0x1b   : > { %v1589_v31 = vld [vmem:[%s236_s9 + $0xc] sm:$0x7]  ;;  %v1592_v32 = vperm.slane %v1583_v28, 1  ;;  %v1595_v33 = vperm.slane %v1585_v29, 1  ;;  %v1598_v34 = vperm.slane %v1587_v30, 1  ;;  %v1604_v36 = vperm.slane %v1583_v28, 0 }
  0x1c   : > { %v1601_v35 = vperm.slane %v1589_v31, 1  ;;  %v1607_v37 = vperm.slane %v1585_v29, 0  ;;  %v1610_v38 = vperm.slane %v1587_v30, 0  ;;  %v1613_v39 = vperm.slane %v1589_v31, 0  ;;  %s1175_s9 = sshll.u32 %s217_s8, 4  ;;  %s1379_s10 = scalar_lea.hbm %s2546_s3, 2  ;;  %s1176_s9 = int_to_ptr.vmem [resolvable:$true] %s1175_s9 }
  0x1d   : > { %291 = vperm.xlu2 %1350, %v252_v4  }
  0x1e   : > { %281 = vperm.xlu1 %1349, %v250_v5   ;;  %271 = vperm.xlu0 %1348, %v248_v6  }
  0x25   : > { %306 = vperm.xlu2 %1350, %v255_v7  }
  0x26   : > { %301 = vperm.xlu1 %1349, %v254_v8   ;;  %296 = vperm.xlu0 %1348, %v253_v9  }
  0x2d   : > { %321 = vperm.xlu2 %1350, %v258_v10  }
  0x2e   : > { %316 = vperm.xlu1 %1349, %v257_v11   ;;  %311 = vperm.xlu0 %1348, %v256_v12  }
  0x35   : > { %336 = vperm.xlu2 %1350, %v261_v13  }
  0x36   : > { %331 = vperm.xlu1 %1349, %v260_v14   ;;  %326 = vperm.xlu0 %1348, %v259_v15  }
  0x3d   : > { %1352 = vset.pattern.permute.xlu2 %v1424_v17 }
  0x3e   : > { %1351 = vset.pattern.permute.xlu1 %v1424_v17  ;;  %341 = vperm.xlu0 %1348, %v1555_v16  }
  0x3f   : > { %366 = vperm.xlu2 %1352, %v248_v6   ;;  %362 = vperm.xlu1 %1351, %v247_v2  }
  0x46   : > { %1353 = vset.pattern.permute.xlu0 %v1424_v17 }
  0x47   : > { %378 = vperm.xlu2 %1352, %v1507_v0   ;;  %374 = vperm.xlu1 %1351, %v250_v5  }
  0x48   : > { %370 = vperm.xlu0 %1353, %v249_v1  }
  0x4f   : > { %386 = vperm.xlu2 %1352, %v253_v9   ;;  %382 = vperm.xlu1 %1351, %v252_v4  }
  0x50   : > { %390 = vperm.xlu0 %1353, %v254_v8  }
  0x57   : > { %398 = vperm.xlu2 %1352, %v256_v12   ;;  %394 = vperm.xlu1 %1351, %v255_v7  }
  0x58   : > { %402 = vperm.xlu0 %1353, %v257_v11  }
  0x5f   : > { %410 = vperm.xlu2 %1352, %v259_v15   ;;  %406 = vperm.xlu1 %1351, %v258_v10  }
  0x60   : > { %414 = vperm.xlu0 %1353, %v260_v14  }
  0x67   : > { %422 = vperm.xlu2 %1352, %v1555_v16   ;;  %418 = vperm.xlu1 %1351, %v261_v13  }
  0x68   : > { %1354 = vset.pattern.permute.xlu0 %v1425_v18 }
  0x69   : > { %459 = vperm.xlu0 %1354, %v247_v2  }
  0x6f   : > { %1356 = vset.pattern.permute.xlu2 %v1425_v18  ;;  %1355 = vset.pattern.permute.xlu1 %v1425_v18  ;;  %v287_v19 = vpop.permute.xlu2 %286 }
  0x70   : > { %467 = vperm.xlu2 %1356, %v249_v1   ;;  %463 = vperm.xlu1 %1355, %v248_v6   ;;  %v349_v58 = vmul.f32 %v1604_v36, %v287_v19  ;;  %v594_v59 = vmul.f32 %v1607_v37, %v287_v19  ;;  %v711_v60 = vmul.f32 %v1610_v38, %v287_v19 }
  0x71   : > { %479 = vperm.xlu0 %1354, %v252_v4   ;;  %v828_v61 = vmul.f32 %v1613_v39, %v287_v19 }
  0x77   : > { %v1560_v20 = vpop.permute.xlu2 %291 }
  0x78   : > { %475 = vperm.xlu2 %1356, %v1507_v0   ;;  %471 = vperm.xlu1 %1355, %v250_v5  }
  0x79   : > { %491 = vperm.xlu0 %1354, %v255_v7  }
  0x7f   : > { %v1563_v21 = vpop.permute.xlu2 %306 }
  0x80   : > { %487 = vperm.xlu2 %1356, %v254_v8   ;;  %483 = vperm.xlu1 %1355, %v253_v9  }
  0x81   : > { %503 = vperm.xlu0 %1354, %v258_v10  }
  0x87   : > { %v1566_v22 = vpop.permute.xlu2 %321 }
  0x88   : > { %v1568_v23 = vpop.permute.xlu1 %276  ;;  %499 = vperm.xlu2 %1356, %v257_v11   ;;  %v1570_v24 = vpop.permute.xlu0 %266  ;;  %495 = vperm.xlu1 %1355, %v256_v12  }
  0x89   : > { %515 = vperm.xlu0 %1354, %v261_v13  }
  0x8f   : > { %v1576_v25 = vpop.permute.xlu2 %336 }
  0x90   : > { %v1578_v26 = vpop.permute.xlu1 %281  ;;  %511 = vperm.xlu2 %1356, %v260_v14   ;;  %v272_v27 = vpop.permute.xlu0 %271  ;;  %507 = vperm.xlu1 %1355, %v259_v15  }
  0x91   : > { %v346_v43 = vmul.f32 %v1604_v36, %v272_v27  ;;  %v591_v44 = vmul.f32 %v1607_v37, %v272_v27  ;;  %v708_v45 = vmul.f32 %v1610_v38, %v272_v27  ;;  %v825_v46 = vmul.f32 %v1613_v39, %v272_v27 }
  0x98   : > { %v1615_v40 = vpop.permute.xlu1 %301  ;;  %v297_v41 = vpop.permute.xlu0 %296  ;;  %519 = vperm.xlu1 %1355, %v1555_v16  }
  0x99   : > { %v367_v42 = vpop.permute.xlu2 %366  ;;  %v351_v9 = vmul.f32 %v1604_v36, %v297_v41  ;;  %v596_v10 = vmul.f32 %v1607_v37, %v297_v41  ;;  %v713_v11 = vmul.f32 %v1610_v38, %v297_v41  ;;  %v830_v16 = vmul.f32 %v1613_v39, %v297_v41 }
  0x9a   : > { %v427_v47 = vmul.f32 %v1592_v32, %v367_v42  ;;  %v608_v48 = vmul.f32 %v1595_v33, %v367_v42  ;;  %v725_v49 = vmul.f32 %v1598_v34, %v367_v42  ;;  %v842_v50 = vmul.f32 %v1601_v35, %v367_v42 }
  0x9b   : > { %v1674_v42 = vmul.f32 %v1604_v36, %v1560_v20  ;;  %v1686_v41 = vmul.f32 %v1613_v39, %v1560_v20 }
  0x9c   : > { %v1626_v51 = vadd.f32 %v427_v47, %v346_v43  ;;  %v1628_v52 = vadd.f32 %v608_v48, %v591_v44  ;;  %v1630_v53 = vadd.f32 %v725_v49, %v708_v45  ;;  %v1632_v54 = vadd.f32 %v842_v50, %v825_v46 }
  0x9d   : > { %v1678_v43 = vmul.f32 %v1607_v37, %v1560_v20  ;;  %v1682_v44 = vmul.f32 %v1610_v38, %v1560_v20  ;;  %v1690_v45 = vmul.f32 %v1604_v36, %v1563_v21  ;;  %v1694_v46 = vmul.f32 %v1607_v37, %v1563_v21 }
  0x9e   : > { %2551 = vst [vmem:[#allocation5_spill] sm:$0xff] %v1626_v51  ;;  %v1698_v47 = vmul.f32 %v1610_v38, %v1563_v21  ;;  %v1704_v49 = vmul.f32 %v1613_v39, %v1563_v21  ;;  %v1708_v20 = vmul.f32 %v1604_v36, %v1566_v22 }
  0x9f   : > { %2552 = vst [vmem:[#allocation6_spill] sm:$0xff] %v1628_v52 }
  0xa0   : > { %2553 = vst [vmem:[#allocation7_spill] sm:$0xff] %v1630_v53  ;;  %v1634_v55 = vpop.permute.xlu1 %316  ;;  %v312_v56 = vpop.permute.xlu0 %311  ;;  %v1825_v53 = vmul.f32 %v1613_v39, %v1615_v40 }
  0xa1   : > { %2554 = vst [vmem:[#allocation8_spill] sm:$0xff] %v1632_v54  ;;  %v379_v57 = vpop.permute.xlu2 %378  ;;  %v354_v50 = vmul.f32 %v1604_v36, %v312_v56  ;;  %v1821_v54 = vmul.f32 %v1610_v38, %v1615_v40  ;;  %v1829_v52 = vmul.f32 %v1604_v36, %v1634_v55  ;;  %v1833_v51 = vmul.f32 %v1607_v37, %v1634_v55 }
  0xa2   : > { %v430_v62 = vmul.f32 %v1592_v32, %v379_v57  ;;  %v611_v63 = vmul.f32 %v1595_v33, %v379_v57  ;;  %v728_v0 = vmul.f32 %v1598_v34, %v379_v57  ;;  %v845_v1 = vmul.f32 %v1601_v35, %v379_v57  ;;  %2563 = vst [vmem:[#allocation17_spill] sm:$0xff] %v1708_v20 }
  0xa3   : > { %v599_v57 = vmul.f32 %v1607_v37, %v312_v56  ;;  %2575 = vst [vmem:[#allocation29_spill] sm:$0xff] %v1825_v53 }
  0xa4   : > { %v1644_v2 = vadd.f32 %v430_v62, %v349_v58  ;;  %v1646_v3 = vadd.f32 %v611_v63, %v594_v59  ;;  %v1648_v4 = vadd.f32 %v728_v0, %v711_v60  ;;  %v1650_v5 = vadd.f32 %v845_v1, %v828_v61 }
  0xa5   : > { %v716_v60 = vmul.f32 %v1610_v38, %v312_v56  ;;  %v1720_v63 = vmul.f32 %v1607_v37, %v1566_v22  ;;  %v1724_v0 = vmul.f32 %v1610_v38, %v1566_v22  ;;  %v1728_v1 = vmul.f32 %v1613_v39, %v1566_v22 }
  0xa6   : > { %2555 = vst [vmem:[#allocation9_spill] sm:$0xff] %v1644_v2  ;;  %v1747_v22 = vmul.f32 %v1610_v38, %v1568_v23 }
  0xa7   : > { %2556 = vst [vmem:[#allocation10_spill] sm:$0xff] %v1646_v3 }
  0xa8   : > { %2557 = vst [vmem:[#allocation11_spill] sm:$0xff] %v1648_v4  ;;  %v1652_v6 = vpop.permute.xlu1 %331  ;;  %v1654_v7 = vpop.permute.xlu0 %326 }
  0xa9   : > { %2558 = vst [vmem:[#allocation12_spill] sm:$0xff] %v1650_v5  ;;  %v387_v8 = vpop.permute.xlu2 %386  ;;  %v1851_v4 = vmul.f32 %v1604_v36, %v1652_v6 }
  0xaa   : > { %v432_v12 = vmul.f32 %v1592_v32, %v387_v8  ;;  %v613_v13 = vmul.f32 %v1595_v33, %v387_v8  ;;  %v730_v14 = vmul.f32 %v1598_v34, %v387_v8  ;;  %v847_v15 = vmul.f32 %v1601_v35, %v387_v8  ;;  %2564 = vst [vmem:[#allocation18_spill] sm:$0xff] %v1720_v63 }
  0xab   : > { %2565 = vst [vmem:[#allocation19_spill] sm:$0xff] %v1724_v0 }
  0xac   : > { %v1664_v17 = vadd.f32 %v432_v12, %v351_v9  ;;  %v1666_v18 = vadd.f32 %v613_v13, %v596_v10  ;;  %v1668_v19 = vadd.f32 %v730_v14, %v713_v11  ;;  %v1670_v27 = vadd.f32 %v847_v15, %v830_v16  ;;  %2566 = vst [vmem:[#allocation20_spill] sm:$0xff] %v1728_v1 }
  0xad   : > { %v1733_v9 = vmul.f32 %v1604_v36, %v1568_v23  ;;  %v1743_v13 = vmul.f32 %v1607_v37, %v1568_v23  ;;  %v1751_v14 = vmul.f32 %v1613_v39, %v1568_v23  ;;  %v833_v15 = vmul.f32 %v1613_v39, %v312_v56 }
  0xae   : > { %2559 = vst [vmem:[#allocation13_spill] sm:$0xff] %v1664_v17  ;;  %v345_v16 = vmul.f32 %v1604_v36, %v1570_v24  ;;  %v1770_v23 = vmul.f32 %v1604_v36, %v1576_v25  ;;  %v1774_v56 = vmul.f32 %v1607_v37, %v1576_v25  ;;  %v1817_v17 = vmul.f32 %v1607_v37, %v1615_v40 }
  0xaf   : > { %2560 = vst [vmem:[#allocation14_spill] sm:$0xff] %v1666_v18 }
  0xb0   : > { %2561 = vst [vmem:[#allocation15_spill] sm:$0xff] %v1668_v19  ;;  %v1700_v48 = vpop.permute.xlu0 %341 }
  0xb1   : > { %2562 = vst [vmem:[#allocation16_spill] sm:$0xff] %v1670_v27  ;;  %v399_v58 = vpop.permute.xlu2 %398  ;;  %v1712_v59 = vpop.permute.xlu1 %362 }
  0xb2   : > { %v435_v61 = vmul.f32 %v1592_v32, %v399_v58  ;;  %v616_v62 = vmul.f32 %v1595_v33, %v399_v58  ;;  %v733_v21 = vmul.f32 %v1598_v34, %v399_v58  ;;  %v850_v8 = vmul.f32 %v1601_v35, %v399_v58  ;;  %2570 = vst [vmem:[#allocation24_spill] sm:$0xff] %v1770_v23 }
  0xb3   : > { %v1766_v58 = vmul.f32 %v1613_v39, %v1570_v24  ;;  %2571 = vst [vmem:[#allocation25_spill] sm:$0xff] %v1774_v56  ;;  %v1843_v23 = vmul.f32 %v1610_v38, %v1634_v55 }
  0xb4   : > { %v1735_v10 = vadd.f32 %v435_v61, %v354_v50  ;;  %v1737_v11 = vadd.f32 %v616_v62, %v599_v57  ;;  %v1739_v12 = vadd.f32 %v733_v21, %v716_v60  ;;  %v1758_v50 = vmul.f32 %v1607_v37, %v1570_v24 }
  0xb5   : > { %v1762_v57 = vmul.f32 %v1610_v38, %v1570_v24  ;;  %v1778_v60 = vmul.f32 %v1610_v38, %v1576_v25  ;;  %v1780_v61 = vadd.f32 %v850_v8, %v833_v15  ;;  %v1784_v62 = vmul.f32 %v1613_v39, %v1576_v25 }
  0xb6   : > { %2567 = vst [vmem:[#allocation21_spill] sm:$0xff] %v1735_v10  ;;  %v1788_v24 = vmul.f32 %v1604_v36, %v1578_v26  ;;  %v1792_v21 = vmul.f32 %v1607_v37, %v1578_v26  ;;  %v1800_v8 = vmul.f32 %v1613_v39, %v1578_v26  ;;  %v1804_v25 = vmul.f32 %v1604_v36, %v1615_v40 }
  0xb7   : > { %2568 = vst [vmem:[#allocation22_spill] sm:$0xff] %v1737_v11  ;;  %v357_v15 = vmul.f32 %v1604_v36, %v1654_v7  ;;  %v719_v10 = vmul.f32 %v1610_v38, %v1654_v7  ;;  %v1847_v40 = vmul.f32 %v1613_v39, %v1634_v55  ;;  %v836_v55 = vmul.f32 %v1613_v39, %v1654_v7 }
  0xb8   : > { %2569 = vst [vmem:[#allocation23_spill] sm:$0xff] %v1739_v12  ;;  %v1796_v12 = vmul.f32 %v1610_v38, %v1578_v26 }
  0xb9   : > { %2572 = vst [vmem:[#allocation26_spill] sm:$0xff] %v1778_v60  ;;  %v375_v11 = vpop.permute.xlu1 %374 }
  0xba   : > { %2573 = vst [vmem:[#allocation27_spill] sm:$0xff] %v1780_v61  ;;  %v411_v61 = vpop.permute.xlu2 %410  ;;  %v371_v18 = vpop.permute.xlu0 %370  ;;  %v727_v1 = vmul.f32 %v1598_v34, %v375_v11  ;;  %v844_v20 = vmul.f32 %v1601_v35, %v375_v11 }
  0xbb   : > { %2574 = vst [vmem:[#allocation28_spill] sm:$0xff] %v1784_v62  ;;  %v602_v62 = vmul.f32 %v1607_v37, %v1654_v7  ;;  %v438_v27 = vmul.f32 %v1592_v32, %v411_v61  ;;  %v619_v26 = vmul.f32 %v1595_v33, %v411_v61  ;;  %v736_v19 = vmul.f32 %v1598_v34, %v411_v61 }
  0xbc   : > { %2579 = vst [vmem:[#allocation33_spill] sm:$0xff] %v1847_v40  ;;  %v722_v7 = vmul.f32 %v1610_v38, %v1700_v48  ;;  %v853_v40 = vmul.f32 %v1601_v35, %v411_v61  ;;  %v726_v53 = vmul.f32 %v1598_v34, %v371_v18  ;;  %v843_v2 = vmul.f32 %v1601_v35, %v371_v18 }
  0xbd   : > { %v1835_v60 = vadd.f32 %v438_v27, %v357_v15  ;;  %v1837_v56 = vadd.f32 %v619_v26, %v602_v62  ;;  %v1839_v5 = vadd.f32 %v736_v19, %v719_v10  ;;  %v426_v27 = vmul.f32 %v1592_v32, %v1712_v59 }
  0xbe   : > { %v1857_v62 = vmul.f32 %v1607_v37, %v1652_v6  ;;  %v1861_v19 = vmul.f32 %v1610_v38, %v1652_v6  ;;  %v1865_v10 = vmul.f32 %v1613_v39, %v1652_v6  ;;  %v1870_v15 = vperm.slane %v1583_v28, 2 }
  0xbf   : > { %2576 = vst [vmem:[#allocation30_spill] sm:$0xff] %v1835_v60  ;;  %v1873_v26 = vperm.slane %v1585_v29, 2  ;;  %v360_v60 = vmul.f32 %v1604_v36, %v1700_v48  ;;  %v605_v6 = vmul.f32 %v1607_v37, %v1700_v48  ;;  %v1889_v28 = vmul.f32 %v1613_v39, %v1700_v48 }
  0xc0   : > { %2577 = vst [vmem:[#allocation31_spill] sm:$0xff] %v1837_v56  ;;  %v1879_v56 = vperm.slane %v1589_v31, 2  ;;  %v1891_v29 = vadd.f32 %v426_v27, %v345_v16  ;;  %v724_v31 = vmul.f32 %v1598_v34, %v1712_v59  ;;  %v841_v36 = vmul.f32 %v1601_v35, %v1712_v59 }
  0xc1   : > { %2578 = vst [vmem:[#allocation32_spill] sm:$0xff] %v1839_v5  ;;  %v1876_v5 = vperm.slane %v1587_v30, 2  ;;  %v607_v30 = vmul.f32 %v1595_v33, %v1712_v59  ;;  %v383_v37 = vpop.permute.xlu1 %382  ;;  %v429_v27 = vmul.f32 %v1592_v32, %v375_v11  ;;  %v609_v59 = vmul.f32 %v1595_v33, %v371_v18 }
  0xc2   : > { %2580 = vst [vmem:[#allocation34_spill] sm:$0xff] %v1857_v62  ;;  %v391_v16 = vpop.permute.xlu0 %390  ;;  %v431_v62 = vmul.f32 %v1592_v32, %v383_v37 }
  0xc3   : > { %2581 = vst [vmem:[#allocation35_spill] sm:$0xff] %v1861_v19  ;;  %v1915_v3 = vadd.f32 %v607_v30, %v1758_v50  ;;  %v1921_v19 = vadd.f32 %v724_v31, %v1762_v57  ;;  %v433_v50 = vmul.f32 %v1592_v32, %v391_v16  ;;  %v1933_v30 = vadd.f32 %v853_v40, %v836_v55 }
  0xc4   : > { %2582 = vst [vmem:[#allocation36_spill] sm:$0xff] %v1865_v10  ;;  %v423_v10 = vpop.permute.xlu2 %422  ;;  %v1939_v57 = vadd.f32 %v727_v1, %v1796_v12  ;;  %v1949_v40 = vadd.f32 %v844_v20, %v1800_v8  ;;  %v731_v20 = vmul.f32 %v1598_v34, %v391_v16 }
  0xc5   : > { %2583 = vst [vmem:[#allocation37_spill] sm:$0xff] %v1889_v28  ;;  %v441_v38 = vmul.f32 %v1592_v32, %v423_v10  ;;  %v622_v39 = vmul.f32 %v1595_v33, %v423_v10  ;;  %v739_v48 = vmul.f32 %v1598_v34, %v423_v10  ;;  %v428_v28 = vmul.f32 %v1592_v32, %v371_v18 }
  0xc6   : > { %2584 = vst [vmem:[#allocation38_spill] sm:$0xff] %v1891_v29  ;;  %v610_v29 = vmul.f32 %v1595_v33, %v375_v11  ;;  %v1931_v11 = vadd.f32 %v841_v36, %v1766_v58  ;;  %v859_v58 = vadd.f32 %v843_v2, %v1751_v14  ;;  %v614_v2 = vmul.f32 %v1595_v33, %v391_v16 }
  0xc7   : > { %v1908_v0 = vadd.f32 %v441_v38, %v360_v60  ;;  %v1910_v61 = vadd.f32 %v622_v39, %v605_v6  ;;  %v1912_v63 = vadd.f32 %v739_v48, %v722_v7  ;;  %v612_v60 = vmul.f32 %v1595_v33, %v383_v37 }
  0xc8   : > { %v729_v6 = vmul.f32 %v1598_v34, %v383_v37  ;;  %v1927_v7 = vadd.f32 %v429_v27, %v1788_v24  ;;  %v1936_v18 = vadd.f32 %v610_v29, %v1792_v21  ;;  %v444_v31 = vadd.f32 %v428_v28, %v1733_v9 }
  0xc9   : > { %2585 = vst [vmem:[#allocation39_spill] sm:$0xff] %v1910_v61  ;;  %v625_v38 = vadd.f32 %v609_v59, %v1743_v13  ;;  %v742_v24 = vadd.f32 %v726_v53, %v1747_v22  ;;  %v1945_v39 = vmul.f32 %v1601_v35, %v423_v10  ;;  %v395_v48 = vpop.permute.xlu1 %394  ;;  %v1952_v21 = vadd.f32 %v431_v62, %v1674_v42 }
  0xca   : > { %2586 = vst [vmem:[#allocation40_spill] sm:$0xff] %v1912_v63  ;;  %v1955_v1 = vadd.f32 %v612_v60, %v1678_v43  ;;  %v1958_v9 = vadd.f32 %v729_v6, %v1682_v44  ;;  %v846_v53 = vmul.f32 %v1601_v35, %v383_v37  ;;  %v403_v12 = vpop.permute.xlu0 %402  ;;  %v1962_v22 = vadd.f32 %v433_v50, %v1804_v25 }
  0xcb   : > { %v434_v42 = vmul.f32 %v1592_v32, %v395_v48  ;;  %v615_v14 = vmul.f32 %v1595_v33, %v395_v48  ;;  %v732_v43 = vmul.f32 %v1598_v34, %v395_v48  ;;  %v849_v44 = vmul.f32 %v1601_v35, %v395_v48 }
  0xcc   : > { %v468_v13 = vpop.permute.xlu2 %467  ;;  %v436_v62 = vmul.f32 %v1592_v32, %v403_v12  ;;  %v617_v10 = vmul.f32 %v1595_v33, %v403_v12  ;;  %v734_v25 = vmul.f32 %v1598_v34, %v403_v12  ;;  %v848_v28 = vmul.f32 %v1601_v35, %v391_v16 }
  0xcd   : > { %v525_v8 = vmul.f32 %v1870_v15, %v468_v13  ;;  %v642_v55 = vmul.f32 %v1873_v26, %v468_v13  ;;  %v759_v36 = vmul.f32 %v1876_v5, %v468_v13  ;;  %v876_v37 = vmul.f32 %v1879_v56, %v468_v13 }
  0xce   : > { %v1979_v27 = vadd.f32 %v614_v2, %v1817_v17  ;;  %v1982_v59 = vadd.f32 %v731_v20, %v1821_v54  ;;  %v1985_v6 = vadd.f32 %v846_v53, %v1686_v41  ;;  %v1988_v50 = vadd.f32 %v434_v42, %v1690_v45 }
  0xcf   : > { %v541_v29 = vadd.f32 %v525_v8, %v444_v31  ;;  %v658_v60 = vadd.f32 %v642_v55, %v625_v38  ;;  %v1991_v16 = vadd.f32 %v615_v14, %v1694_v46  ;;  %v1994_v31 = vadd.f32 %v732_v43, %v1698_v47  ;;  %v2589_v8 = vld [vmem:[#allocation35_spill] sm:$0xff] }
  0xd0   : > { %v1997_v48 = vmul.f32 %v1601_v35, %v403_v12  ;;  %v2000_v17 = vadd.f32 %v436_v62, %v1829_v52  ;;  %v2003_v54 = vadd.f32 %v617_v10, %v1833_v51  ;;  %v2006_v41 = vadd.f32 %v734_v25, %v1843_v23  ;;  %v2591_v25 = vld [vmem:[#allocation9_spill] sm:$0xff] }
  0xd1   : > { %v407_v45 = vpop.permute.xlu1 %406  ;;  %v2009_v38 = vadd.f32 %v849_v44, %v1704_v49  ;;  %v557_v46 = vmax.f32 %v541_v29, 0.0  ;;  %v674_v53 = vmax.f32 %v658_v60, 0.0  ;;  %v775_v2 = vadd.f32 %v759_v36, %v742_v24 }
  0xd2   : > { %2587 = vst [vmem:[#allocation41_spill] sm:$0xff] %v2006_v41  ;;  %v415_v47 = vpop.permute.xlu0 %414  ;;  %v892_v12 = vadd.f32 %v876_v37, %v859_v58  ;;  %v437_v52 = vmul.f32 %v1592_v32, %v407_v45  ;;  %v618_v42 = vmul.f32 %v1595_v33, %v407_v45  ;;  %v735_v49 = vmul.f32 %v1598_v34, %v407_v45  ;;  %v2588_v58 = vld [vmem:[#allocation34_spill] sm:$0xff]  ;;  %v2592_v37 = vld [vmem:[#allocation29_spill] sm:$0xff]  ;;  %v2613_v41 = vld [vmem:[#allocation7_spill] sm:$0xff] }
  0xd3   : > { %v439_v20 = vmul.f32 %v1592_v32, %v415_v47  ;;  %v620_v51 = vmul.f32 %v1595_v33, %v415_v47  ;;  %v737_v23 = vmul.f32 %v1598_v34, %v415_v47  ;;  %v852_v14 = vmul.f32 %v1601_v35, %v407_v45  ;;  %v2593_v45 = vld [vmem:[#allocation17_spill] sm:$0xff] }
  0xd4   : > { %v476_v13 = vpop.permute.xlu2 %475  ;;  %v690_v36 = vadd.f32 %v674_v53, %v557_v46  ;;  %v2032_v60 = vadd.f32 %v848_v28, %v2592_v37  ;;  %v2035_v63 = vadd.f32 %v437_v52, %v2593_v45  ;;  %v2598_v53 = vld [vmem:[#allocation37_spill] sm:$0xff]  ;;  %v908_v37 = vmax.f32 %v892_v12, 0.0  ;;  %v2600_v45 = vld [vmem:[#allocation20_spill] sm:$0xff] }
  0xd5   : > { %v527_v43 = vmul.f32 %v1870_v15, %v476_v13  ;;  %v2020_v24 = vadd.f32 %v439_v20, %v1851_v4  ;;  %v2023_v44 = vadd.f32 %v620_v51, %v2588_v58  ;;  %v2026_v62 = vadd.f32 %v737_v23, %v2589_v8  ;;  %v2595_v20 = vld [vmem:[#allocation10_spill] sm:$0xff] }
  0xd6   : > { %v644_v10 = vmul.f32 %v1873_v26, %v476_v13  ;;  %v761_v29 = vmul.f32 %v1876_v5, %v476_v13  ;;  %v2038_v4 = vmul.f32 %v1601_v35, %v415_v47  ;;  %v791_v23 = vmax.f32 %v775_v2, 0.0  ;;  %v2596_v58 = vld [vmem:[#allocation18_spill] sm:$0xff] }
  0xd7   : > { %2590 = vst [vmem:[#allocation34_spill] sm:$0xff] %v2026_v62  ;;  %v543_v55 = vadd.f32 %v527_v43, %v2591_v25  ;;  %v2042_v8 = vadd.f32 %v618_v42, %v2596_v58  ;;  %v2597_v62 = vld [vmem:[#allocation19_spill] sm:$0xff]  ;;  %v878_v46 = vmul.f32 %v1879_v56, %v476_v13  ;;  %v2050_v28 = vadd.f32 %v1945_v39, %v2598_v53 }
  0xd8   : > { %2594 = vst [vmem:[#allocation35_spill] sm:$0xff] %v2038_v4  ;;  %v660_v51 = vadd.f32 %v644_v10, %v2595_v20  ;;  %v2045_v43 = vadd.f32 %v735_v49, %v2597_v62  ;;  %v807_v25 = vadd.f32 %v791_v23, %v690_v36  ;;  %v2053_v4 = vadd.f32 %v852_v14, %v2600_v45  ;;  %v2601_v62 = vld [vmem:[#allocation11_spill] sm:$0xff]  ;;  %v2602_v36 = vld [vmem:[#allocation24_spill] sm:$0xff] }
  0xd9   : > { %2599 = vst [vmem:[#allocation9_spill] sm:$0xff] %v2050_v28  ;;  %v559_v52 = vmax.f32 %v543_v55, 0.0  ;;  %v419_v47 = vpop.permute.xlu1 %418  ;;  %v777_v20 = vadd.f32 %v761_v29, %v2601_v62  ;;  %v2605_v62 = vld [vmem:[#allocation26_spill] sm:$0xff] }
  0xda   : > { %v676_v2 = vmax.f32 %v660_v51, 0.0  ;;  %v440_v42 = vmul.f32 %v1592_v32, %v419_v47  ;;  %v621_v10 = vmul.f32 %v1595_v33, %v419_v47  ;;  %v924_v13 = vadd.f32 %v908_v37, %v807_v25  ;;  %v2603_v33 = vld [vmem:[#allocation12_spill] sm:$0xff] }
  0xdb   : > { %v738_v58 = vmul.f32 %v1598_v34, %v419_v47  ;;  %v460_v12 = vpop.permute.xlu0 %459  ;;  %v2065_v14 = vmul.f32 %v1601_v35, %v419_v47  ;;  %v2069_v51 = vadd.f32 %v878_v46, %v2603_v33  ;;  %v2604_v46 = vld [vmem:[#allocation25_spill] sm:$0xff] }
  0xdc   : > { %v488_v49 = vpop.permute.xlu2 %487  ;;  %v2062_v23 = vadd.f32 %v440_v42, %v2602_v36  ;;  %v945_v29 = vsel %vm938_vm0, %v924_v13, 0.0  ;;  %v523_v25 = vmul.f32 %v1870_v15, %v460_v12  ;;  %v640_v37 = vmul.f32 %v1873_v26, %v460_v12 }
  0xdd   : > { %v530_v39 = vmul.f32 %v1870_v15, %v488_v49  ;;  %v647_v55 = vmul.f32 %v1873_v26, %v488_v49  ;;  %v764_v32 = vmul.f32 %v1876_v5, %v488_v49  ;;  %946 = vadd.xlane.f32.xlu1 %v945_v29  ;;  %v757_v35 = vmul.f32 %v1876_v5, %v460_v12 }
  0xde   : > { %v874_v47 = vmul.f32 %v1879_v56, %v460_v12  ;;  %v692_v45 = vadd.f32 %v676_v2, %v559_v52  ;;  %v2083_v42 = vadd.f32 %v621_v10, %v2604_v46  ;;  %v2086_v13 = vadd.f32 %v738_v58, %v2605_v62 }
  0xdf   : > { %v2073_v34 = vadd.f32 %v530_v39, %v1962_v22  ;;  %v2076_v53 = vadd.f32 %v647_v55, %v1979_v27  ;;  %v2606_v22 = vld [vmem:[#allocation38_spill] sm:$0xff]  ;;  %v793_v27 = vmax.f32 %v777_v20, 0.0  ;;  %v2090_v55 = vmul.f32 %v1879_v56, %v488_v49  ;;  %v2607_v49 = vld [vmem:[#allocation33_spill] sm:$0xff] }
  0xe0   : > { %v539_v39 = vadd.f32 %v523_v25, %v2606_v22  ;;  %v656_v36 = vadd.f32 %v640_v37, %v1915_v3  ;;  %v773_v33 = vadd.f32 %v757_v35, %v1921_v19  ;;  %v890_v29 = vadd.f32 %v874_v47, %v1931_v11 }
  0xe1   : > { %v2097_v10 = vadd.f32 %v793_v27, %v692_v45  ;;  %v2102_v62 = vadd.f32 %v1997_v48, %v2607_v49  ;;  %v2107_v47 = vadd.f32 %v764_v32, %v1982_v59  ;;  %v2610_v32 = vld [vmem:[#allocation5_spill] sm:$0xff]  ;;  %v2611_v49 = vld [vmem:[#allocation6_spill] sm:$0xff] }
  0xe2   : > { %v555_v12 = vmax.f32 %v539_v39, 0.0  ;;  %v672_v25 = vmax.f32 %v656_v36, 0.0  ;;  %v789_v46 = vmax.f32 %v773_v33, 0.0  ;;  %v464_v11 = vpop.permute.xlu1 %463  ;;  %v906_v35 = vmax.f32 %v890_v29, 0.0 }
  0xe3   : > { %2608 = vst [vmem:[#allocation29_spill] sm:$0xff] %v2102_v62  ;;  %v480_v37 = vpop.permute.xlu0 %479  ;;  %v524_v22 = vmul.f32 %v1870_v15, %v464_v11  ;;  %v641_v39 = vmul.f32 %v1873_v26, %v464_v11  ;;  %v758_v48 = vmul.f32 %v1876_v5, %v464_v11  ;;  %v875_v52 = vmul.f32 %v1879_v56, %v464_v11 }
  0xe4   : > { %v500_v20 = vpop.permute.xlu2 %499  ;;  %v528_v33 = vmul.f32 %v1870_v15, %v480_v37  ;;  %v645_v59 = vmul.f32 %v1873_v26, %v480_v37  ;;  %v762_v58 = vmul.f32 %v1876_v5, %v480_v37 }
  0xe5   : > { %v533_v3 = vmul.f32 %v1870_v15, %v500_v20  ;;  %v650_v19 = vmul.f32 %v1873_v26, %v500_v20  ;;  %v2110_v45 = vmul.f32 %v1876_v5, %v500_v20  ;;  %v540_v29 = vadd.f32 %v524_v22, %v2610_v32 }
  0xe6   : > { %v657_v2 = vadd.f32 %v641_v39, %v2611_v49  ;;  %v2128_v28 = vmul.f32 %v1879_v56, %v500_v20  ;;  %v774_v22 = vadd.f32 %v758_v48, %v2613_v41 }
  0xe7   : > { %2609 = vst [vmem:[#allocation17_spill] sm:$0xff] %v2110_v45  ;;  %v2116_v27 = vadd.f32 %v533_v3, %v2000_v17  ;;  %v2119_v36 = vadd.f32 %v650_v19, %v2003_v54  ;;  %v544_v17 = vadd.f32 %v528_v33, %v1952_v21  ;;  %v661_v54 = vadd.f32 %v645_v59, %v1955_v1  ;;  %v2614_v21 = vld [vmem:[#allocation8_spill] sm:$0xff] }
  0xe8   : > { %2612 = vst [vmem:[#allocation10_spill] sm:$0xff] %v2128_v28  ;;  %v879_v3 = vmul.f32 %v1879_v56, %v480_v37  ;;  %v556_v19 = vmax.f32 %v540_v29, 0.0  ;;  %v673_v62 = vmax.f32 %v657_v2, 0.0  ;;  %v688_v45 = vadd.f32 %v672_v25, %v555_v12 }
  0xe9   : > { %v560_v32 = vmax.f32 %v544_v17, 0.0  ;;  %v677_v49 = vmax.f32 %v661_v54, 0.0  ;;  %v891_v33 = vadd.f32 %v875_v52, %v2614_v21  ;;  %v778_v1 = vadd.f32 %v762_v58, %v1958_v9 }
  0xea   : > { %v805_v61 = vadd.f32 %v789_v46, %v688_v45  ;;  %v689_v28 = vadd.f32 %v673_v62, %v556_v19  ;;  %v472_v12 = vpop.permute.xlu1 %471  ;;  %v790_v37 = vmax.f32 %v774_v22, 0.0  ;;  %v895_v48 = vadd.f32 %v879_v3, %v1985_v6 }
  0xeb   : > { %v492_v25 = vpop.permute.xlu0 %491  ;;  %v526_v52 = vmul.f32 %v1870_v15, %v472_v12  ;;  %v643_v9 = vmul.f32 %v1873_v26, %v472_v12  ;;  %v760_v45 = vmul.f32 %v1876_v5, %v472_v12 }
  0xec   : > { %v2136_v20 = vpop.permute.xlu2 %511  ;;  %v922_v59 = vadd.f32 %v906_v35, %v805_v61  ;;  %v531_v29 = vmul.f32 %v1870_v15, %v492_v25  ;;  %v648_v17 = vmul.f32 %v1873_v26, %v492_v25  ;;  %v765_v3 = vmul.f32 %v1876_v5, %v492_v25 }
  0xed   : > { %v536_v2 = vmul.f32 %v1870_v15, %v2136_v20  ;;  %v653_v41 = vmul.f32 %v1873_v26, %v2136_v20  ;;  %v2147_v46 = vmul.f32 %v1876_v5, %v2136_v20  ;;  %v542_v6 = vadd.f32 %v526_v52, %v1927_v7 }
  0xee   : > { %v939_v61 = vsel %vm938_vm0, %v922_v59, 0.0  ;;  %v659_v35 = vadd.f32 %v643_v9, %v1936_v18  ;;  %v664_v21 = vadd.f32 %v648_v17, %v1991_v16  ;;  %v907_v18 = vmax.f32 %v891_v33, 0.0 }
  0xef   : > { %v2152_v58 = vadd.f32 %v536_v2, %v2020_v24  ;;  %v2155_v62 = vadd.f32 %v653_v41, %v2023_v44  ;;  %940 = vadd.xlane.f32.xlu2 %v939_v61  ;;  %v877_v24 = vmul.f32 %v1879_v56, %v472_v12  ;;  %v547_v44 = vadd.f32 %v531_v29, %v1988_v50 }
  0xf0   : > { %v558_v19 = vmax.f32 %v542_v6, 0.0  ;;  %v675_v22 = vmax.f32 %v659_v35, 0.0  ;;  %v882_v2 = vmul.f32 %v1879_v56, %v492_v25  ;;  %v806_v41 = vadd.f32 %v790_v37, %v689_v28 }
  0xf1   : > { %v563_v7 = vmax.f32 %v547_v44, 0.0  ;;  %v693_v59 = vadd.f32 %v677_v49, %v560_v32  ;;  %v680_v52 = vmax.f32 %v664_v21, 0.0  ;;  %v794_v9 = vmax.f32 %v778_v1, 0.0  ;;  %v2617_v21 = vld [vmem:[#allocation15_spill] sm:$0xff] }
  0xf2   : > { %v911_v61 = vmax.f32 %v895_v48, 0.0  ;;  %v691_v54 = vadd.f32 %v675_v22, %v558_v19  ;;  %v923_v11 = vadd.f32 %v907_v18, %v806_v41  ;;  %v484_v12 = vpop.permute.xlu1 %483  ;;  %v776_v50 = vadd.f32 %v760_v45, %v1939_v57 }
  0xf3   : > { %v504_v39 = vpop.permute.xlu0 %503  ;;  %v893_v29 = vadd.f32 %v877_v24, %v1949_v40  ;;  %v781_v6 = vadd.f32 %v765_v3, %v1994_v31  ;;  %v529_v16 = vmul.f32 %v1870_v15, %v484_v12  ;;  %v646_v25 = vmul.f32 %v1873_v26, %v484_v12  ;;  %v2615_v40 = vld [vmem:[#allocation13_spill] sm:$0xff]  ;;  %v2616_v31 = vld [vmem:[#allocation14_spill] sm:$0xff] }
  0xf4   : > { %v763_v28 = vmul.f32 %v1876_v5, %v484_v12  ;;  %v880_v32 = vmul.f32 %v1879_v56, %v484_v12  ;;  %v942_v49 = vsel %vm938_vm0, %v923_v11, 0.0  ;;  %v534_v33 = vmul.f32 %v1870_v15, %v504_v39 }
  0xf5   : > { %v651_v1 = vmul.f32 %v1873_v26, %v504_v39  ;;  %v768_v57 = vmul.f32 %v1876_v5, %v504_v39  ;;  %943 = vadd.xlane.f32.xlu0 %v942_v49  ;;  %v545_v37 = vadd.f32 %v529_v16, %v2615_v40  ;;  %v662_v48 = vadd.f32 %v646_v25, %v2616_v31  ;;  %v2618_v49 = vld [vmem:[#allocation16_spill] sm:$0xff] }
  0xf6   : > { %v2183_v45 = vmul.f32 %v1879_v56, %v504_v39  ;;  %v810_v35 = vadd.f32 %v794_v9, %v693_v59  ;;  %v550_v17 = vadd.f32 %v534_v33, %v2035_v63  ;;  %v792_v11 = vmax.f32 %v776_v50, 0.0 }
  0xf7   : > { %v667_v24 = vadd.f32 %v651_v1, %v2042_v8  ;;  %v909_v44 = vmax.f32 %v893_v29, 0.0  ;;  %v561_v3 = vmax.f32 %v545_v37, 0.0  ;;  %v678_v19 = vmax.f32 %v662_v48, 0.0 }
  0xf8   : > { %v927_v22 = vadd.f32 %v911_v61, %v810_v35  ;;  %v779_v41 = vadd.f32 %v763_v28, %v2617_v21  ;;  %v566_v18 = vmax.f32 %v550_v17, 0.0  ;;  %v808_v16 = vadd.f32 %v792_v11, %v691_v54 }
  0xf9   : > { %v683_v12 = vmax.f32 %v667_v24, 0.0  ;;  %v896_v25 = vadd.f32 %v880_v32, %v2618_v49  ;;  %v694_v40 = vadd.f32 %v678_v19, %v561_v3  ;;  %v696_v9 = vadd.f32 %v680_v52, %v563_v7 }
  0xfa   : > { %v954_v39 = vsel %vm938_vm0, %v927_v22, 0.0  ;;  %v795_v59 = vmax.f32 %v779_v41, 0.0  ;;  %v925_v63 = vadd.f32 %v909_v44, %v808_v16  ;;  %v496_v33 = vpop.permute.xlu1 %495  ;;  %v797_v50 = vmax.f32 %v781_v6, 0.0  ;;  %v2620_v6 = vld [vmem:[#allocation22_spill] sm:$0xff]  ;;  %v2622_v16 = vld [vmem:[#allocation23_spill] sm:$0xff] }
  0xfb   : > { %v912_v8 = vmax.f32 %v896_v25, 0.0  ;;  %v898_v29 = vadd.f32 %v882_v2, %v2009_v38  ;;  %v532_v61 = vmul.f32 %v1870_v15, %v496_v33  ;;  %v649_v28 = vmul.f32 %v1873_v26, %v496_v33  ;;  %v516_v32 = vpop.permute.xlu0 %515  ;;  %v2619_v38 = vld [vmem:[#allocation21_spill] sm:$0xff] }
  0xfc   : > { %v766_v1 = vmul.f32 %v1876_v5, %v496_v33  ;;  %v883_v54 = vmul.f32 %v1879_v56, %v496_v33  ;;  %v948_v37 = vsel %vm938_vm0, %v925_v63, 0.0  ;;  %v537_v31 = vmul.f32 %v1870_v15, %v516_v32 }
  0xfd   : > { %v654_v7 = vmul.f32 %v1873_v26, %v516_v32  ;;  %v771_v52 = vmul.f32 %v1876_v5, %v516_v32  ;;  %955 = vadd.xlane.f32.xlu0 %v954_v39  ;;  %949 = vadd.xlane.f32.xlu2 %v948_v37  ;;  %v548_v2 = vadd.f32 %v532_v61, %v2619_v38  ;;  %v914_v17 = vmax.f32 %v898_v29, 0.0 }
  0xfe   : > { %v665_v48 = vadd.f32 %v649_v28, %v2620_v6  ;;  %v2202_v35 = vmul.f32 %v1879_v56, %v516_v32  ;;  %v553_v24 = vadd.f32 %v537_v31, %v2062_v23  ;;  %v811_v44 = vadd.f32 %v795_v59, %v694_v40  ;;  %v2623_v28 = vld [vmem:[#allocation27_spill] sm:$0xff] }
  0xff   : > { %v670_v11 = vadd.f32 %v654_v7, %v2083_v42  ;;  %v813_v3 = vadd.f32 %v797_v50, %v696_v9  ;;  %v564_v19 = vmax.f32 %v548_v2, 0.0  ;;  %v2621_v21 = vmax.f32 %v2069_v51, 0.0 }
 0x100   : > { %v681_v22 = vmax.f32 %v665_v48, 0.0  ;;  %v782_v49 = vadd.f32 %v766_v1, %v2622_v16  ;;  %v569_v25 = vmax.f32 %v553_v24, 0.0  ;;  %v928_v63 = vadd.f32 %v912_v8, %v811_v44 }
 0x101   : > { %v926_v41 = vadd.f32 %v2621_v21, %v2097_v10  ;;  %v686_v39 = vmax.f32 %v670_v11, 0.0  ;;  %v930_v33 = vadd.f32 %v914_v17, %v813_v3  ;;  %v899_v42 = vadd.f32 %v883_v54, %v2623_v28 }
 0x102   : > { %v697_v61 = vadd.f32 %v681_v22, %v564_v19  ;;  %v798_v23 = vmax.f32 %v782_v49, 0.0  ;;  %v957_v40 = vsel %vm938_vm0, %v928_v63, 0.0  ;;  %v508_v9 = vpop.permute.xlu1 %507  ;;  %v699_v50 = vadd.f32 %v683_v12, %v566_v18  ;;  %v2624_v18 = vld [vmem:[#allocation30_spill] sm:$0xff]  ;;  %v2628_v19 = vld [vmem:[#allocation32_spill] sm:$0xff] }
 0x103   : > { %v951_v29 = vsel %vm938_vm0, %v926_v41, 0.0  ;;  %v963_v59 = vsel %vm938_vm0, %v930_v33, 0.0  ;;  %v784_v51 = vadd.f32 %v768_v57, %v2045_v43  ;;  %958 = vadd.xlane.f32.xlu1 %v957_v40  ;;  %v535_v10 = vmul.f32 %v1870_v15, %v508_v9  ;;  %v2625_v43 = vld [vmem:[#allocation31_spill] sm:$0xff] }
 0x104   : > { %v652_v8 = vmul.f32 %v1873_v26, %v508_v9  ;;  %v769_v1 = vmul.f32 %v1876_v5, %v508_v9  ;;  %v886_v32 = vmul.f32 %v1879_v56, %v508_v9  ;;  %v814_v37 = vadd.f32 %v798_v23, %v697_v61  ;;  %v2629_v61 = vld [vmem:[#allocation28_spill] sm:$0xff]  ;;  %v2630_v9 = vld [vmem:[#allocation39_spill] sm:$0xff] }
 0x105   : > { %v915_v31 = vmax.f32 %v899_v42, 0.0  ;;  %v800_v54 = vmax.f32 %v784_v51, 0.0  ;;  %v901_v7 = vadd.f32 %v2183_v45, %v2053_v4  ;;  %964 = vadd.xlane.f32.xlu0 %v963_v59  ;;  %952 = vadd.xlane.f32.xlu2 %v951_v29  ;;  %v551_v12 = vadd.f32 %v535_v10, %v2624_v18  ;;  %v2637_v18 = vld [vmem:[#allocation40_spill] sm:$0xff] }
 0x106   : > { %v668_v57 = vadd.f32 %v652_v8, %v2625_v43  ;;  %v2626_v38 = vmax.f32 %v2073_v34, 0.0  ;;  %v2627_v2 = vmax.f32 %v2076_v53, 0.0  ;;  %v796_v48 = vmax.f32 %v2107_v47, 0.0 }
 0x107   : > { %v931_v17 = vadd.f32 %v915_v31, %v814_v37  ;;  %v816_v24 = vadd.f32 %v800_v54, %v699_v50  ;;  %v917_v11 = vmax.f32 %v901_v7, 0.0  ;;  %v897_v44 = vadd.f32 %v2090_v55, %v2032_v60  ;;  %v2636_v54 = vld [vmem:[#allocation10_spill] sm:$0xff] }
 0x108   : > { %v695_v6 = vadd.f32 %v2627_v2, %v2626_v38  ;;  %v567_v4 = vmax.f32 %v551_v12, 0.0  ;;  %v684_v45 = vmax.f32 %v668_v57, 0.0  ;;  %v785_v22 = vadd.f32 %v769_v1, %v2628_v19  ;;  %v2633_v1 = vld [vmem:[#allocation41_spill] sm:$0xff]  ;;  %v2641_v19 = vld [vmem:[#allocation36_spill] sm:$0xff] }
 0x109   : > { %v966_v21 = vsel %vm938_vm0, %v931_v17, 0.0  ;;  %v933_v41 = vadd.f32 %v917_v11, %v816_v24  ;;  %v913_v34 = vmax.f32 %v897_v44, 0.0  ;;  %v902_v53 = vadd.f32 %v886_v32, %v1933_v30  ;;  %v2634_v32 = vld [vmem:[#allocation17_spill] sm:$0xff]  ;;  %v2640_v44 = vld [vmem:[#allocation34_spill] sm:$0xff] }
 0x10a   : > { %v812_v3 = vadd.f32 %v796_v48, %v695_v6  ;;  %v700_v16 = vadd.f32 %v684_v45, %v567_v4  ;;  %v801_v49 = vmax.f32 %v785_v22, 0.0  ;;  %v702_v47 = vadd.f32 %v686_v39, %v569_v25  ;;  %v520_v60 = vpop.permute.xlu1 %519  ;;  %v2638_v57 = vld [vmem:[#allocation9_spill] sm:$0xff]  ;;  %v2642_v22 = vld [vmem:[#allocation35_spill] sm:$0xff] }
 0x10b   : > { %v787_v63 = vadd.f32 %v771_v52, %v2086_v13  ;;  %v972_v33 = vsel %vm938_vm0, %v933_v41, 0.0  ;;  %v918_v55 = vmax.f32 %v902_v53, 0.0  ;;  %v871_v23 = vadd.f32 %v2065_v14, %v2629_v61  ;;  %967 = vadd.xlane.f32.xlu1 %v966_v21 }
 0x10c   : > { %v929_v29 = vadd.f32 %v913_v34, %v812_v3  ;;  %v538_v28 = vmul.f32 %v1870_v15, %v520_v60  ;;  %v655_v42 = vmul.f32 %v1873_v26, %v520_v60  ;;  %v772_v30 = vmul.f32 %v1876_v5, %v520_v60 }
 0x10d   : > { %v889_v40 = vmul.f32 %v1879_v56, %v520_v60  ;;  %v817_v13 = vadd.f32 %v801_v49, %v700_v16  ;;  %v803_v52 = vmax.f32 %v787_v63, 0.0  ;;  %v904_v39 = vadd.f32 %v2202_v35, %v871_v23  ;;  %973 = vadd.xlane.f32.xlu0 %v972_v33 }
 0x10e   : > { %v960_v25 = vsel %vm938_vm0, %v929_v29, 0.0  ;;  %v685_v59 = vmax.f32 %v2155_v62, 0.0  ;;  %v554_v14 = vadd.f32 %v538_v28, %v1908_v0  ;;  %v671_v15 = vadd.f32 %v655_v42, %v2630_v9  ;;  %v2635_v62 = vld [vmem:[#allocation29_spill] sm:$0xff] }
 0x10f   : > { %961 = vadd.xlane.f32.xlu2 %v960_v25  ;;  %v2631_v26 = vmax.f32 %v2116_v27, 0.0  ;;  %v2632_v5 = vmax.f32 %v2119_v36, 0.0  ;;  %v934_v51 = vadd.f32 %v918_v55, %v817_v13  ;;  %v819_v10 = vadd.f32 %v803_v52, %v702_v47 }
 0x110   : > { %v920_v8 = vmax.f32 %v904_v39, 0.0  ;;  %v783_v37 = vadd.f32 %v2634_v32, %v2633_v1  ;;  %v570_v35 = vmax.f32 %v554_v14, 0.0  ;;  %v687_v31 = vmax.f32 %v671_v15, 0.0 }
 0x111   : > { %v698_v50 = vadd.f32 %v2632_v5, %v2631_v26  ;;  %v900_v7 = vadd.f32 %v2636_v54, %v2635_v62  ;;  %v788_v0 = vadd.f32 %v772_v30, %v2637_v18  ;;  %v975_v12 = vsel %vm938_vm0, %v934_v51, 0.0  ;;  %v1004_v5 = vld [vmem:[%s2545_s2 + $0x8] sm:$0xff]  ;;  %v1006_v18 = vld [vmem:[%s2545_s2 + $0x18] sm:$0xff] }
 0x112   : > { %v936_v43 = vadd.f32 %v920_v8, %v819_v10  ;;  %v799_v27 = vmax.f32 %v783_v37, 0.0  ;;  %v905_v36 = vadd.f32 %v889_v40, %v2638_v57  ;;  %v887_v38 = vmul.f32 %v1879_v56, %v2136_v20  ;;  %v1003_v8 = vld [vmem:[%s2545_s2] sm:$0xff] }
 0x113   : > { %v703_v2 = vadd.f32 %v687_v31, %v570_v35  ;;  %v804_v6 = vmax.f32 %v788_v0, 0.0  ;;  %v2639_v48 = vmax.f32 %v2152_v58, 0.0  ;;  %v916_v11 = vmax.f32 %v900_v7, 0.0  ;;  %976 = vadd.xlane.f32.xlu1 %v975_v12  ;;  %v1005_v7 = vld [vmem:[%s2545_s2 + $0x10] sm:$0xff] }
 0x114   : > { %v815_v24 = vadd.f32 %v799_v27, %v698_v50  ;;  %v786_v4 = vadd.f32 %v2147_v46, %v2640_v44  ;;  %v921_v3 = vmax.f32 %v905_v36, 0.0  ;;  %v870_v21 = vadd.f32 %v2642_v22, %v2641_v19  ;;  %v1007_v36 = vld [vmem:[%s2545_s2 + $0x20] sm:$0xff]  ;;  %v1008_v22 = vld [vmem:[%s2545_s2 + $0x28] sm:$0xff] }
 0x115   : > { %v701_v17 = vadd.f32 %v685_v59, %v2639_v48  ;;  %v820_v45 = vadd.f32 %v804_v6, %v703_v2  ;;  %v981_v41 = vsel %vm938_vm0, %v936_v43, 0.0 }
 0x116   : > { %v932_v56 = vadd.f32 %v916_v11, %v815_v24  ;;  %v802_v20 = vmax.f32 %v786_v4, 0.0  ;;  %982 = vadd.xlane.f32.xlu0 %v981_v41  ;;  %v903_v34 = vadd.f32 %v887_v38, %v870_v21 }
 0x117   : > { %v937_v58 = vadd.f32 %v921_v3, %v820_v45 }
 0x118   : > { %v969_v53 = vsel %vm938_vm0, %v932_v56, 0.0  ;;  %v818_v16 = vadd.f32 %v802_v20, %v701_v17  ;;  %v919_v46 = vmax.f32 %v903_v34, 0.0 }
 0x119   : > { %970 = vadd.xlane.f32.xlu2 %v969_v53  ;;  %v984_v49 = vsel %vm938_vm0, %v937_v58, 0.0 }
 0x11a   : > { %v935_v47 = vadd.f32 %v919_v46, %v818_v16  ;;  %v1009_v46 = vld [vmem:[%s2545_s2 + $0x30] sm:$0xff] }
 0x11b   : > { %985 = vadd.xlane.f32.xlu1 %v984_v49 }
 0x11c   : > { %v978_v63 = vsel %vm938_vm0, %v935_v47, 0.0  ;;  %v1010_v47 = vld [vmem:[%s2545_s2 + $0x38] sm:$0xff] }
 0x121   : > { %979 = vadd.xlane.f32.xlu2 %v978_v63 }
 0x150   : > { %v947_v33 = vpop.xlane.xlu1 %946 }
 0x151   : > { %v2277_v29 = vmul.f32 0.00390625, %v947_v33 }
 0x153   : > { %1060 = vst.msk [vmem:[%s2275_s13 + $0x10] sm:$0xff] %vm1057_vm1, %v2277_v29  ;;  %v1076_v59 = vmul.f32 %v2277_v29, %v2277_v29  ;;  %v1021_v2 = vmul.f32 %v1005_v7, %v2277_v29 }
 0x162   : > { %v941_v60 = vpop.xlane.xlu2 %940 }
 0x163   : > { %v2282_v55 = vmul.f32 0.00390625, %v941_v60 }
 0x165   : > { %1058 = vst.msk [vmem:[%s2275_s13] sm:$0xff] %vm1057_vm1, %v2282_v55  ;;  %v1074_v13 = vmul.f32 %v2282_v55, %v2282_v55  ;;  %v1019_v31 = vmul.f32 %v1003_v8, %v2282_v55 }
 0x168   : > { %v944_v61 = vpop.xlane.xlu0 %943 }
 0x169   : > { %v2287_v23 = vmul.f32 0.00390625, %v944_v61 }
 0x16b   : > { %1059 = vst.msk [vmem:[%s2275_s13 + $0x8] sm:$0xff] %vm1057_vm1, %v2287_v23  ;;  %v1075_v30 = vmul.f32 %v2287_v23, %v2287_v23  ;;  %v1020_v37 = vmul.f32 %v1004_v5, %v2287_v23 }
 0x16d   : > { %v1090_v52 = vadd.f32 %v1075_v30, %v1074_v13  ;;  %v1035_v12 = vadd.f32 %v1020_v37, %v1019_v31  ;;  %v1013_v37 = vld [vmem:[%s2545_s2 + $0x50] sm:$0xff] }
 0x16f   : > { %v1091_v50 = vadd.f32 %v1090_v52, %v1076_v59  ;;  %v1036_v24 = vadd.f32 %v1035_v12, %v1021_v2 }
 0x170   : > { %v956_v28 = vpop.xlane.xlu0 %955  ;;  %v950_v42 = vpop.xlane.xlu2 %949 }
 0x171   : > { %v2294_v40 = vmul.f32 0.00390625, %v956_v28  ;;  %v2296_v25 = vmul.f32 0.00390625, %v950_v42 }
 0x173   : > { %1063 = vst.msk [vmem:[%s2275_s13 + $0x28] sm:$0xff] %vm1057_vm1, %v2294_v40  ;;  %v1077_v14 = vmul.f32 %v2296_v25, %v2296_v25  ;;  %v1079_v62 = vmul.f32 %v2294_v40, %v2294_v40  ;;  %v1022_v6 = vmul.f32 %v1006_v18, %v2296_v25  ;;  %v1024_v53 = vmul.f32 %v1008_v22, %v2294_v40 }
 0x174   : > { %1061 = vst.msk [vmem:[%s2275_s13 + $0x18] sm:$0xff] %vm1057_vm1, %v2296_v25 }
 0x175   : > { %v1092_v1 = vadd.f32 %v1091_v50, %v1077_v14  ;;  %v1037_v45 = vadd.f32 %v1036_v24, %v1022_v6  ;;  %v1011_v14 = vld [vmem:[%s2545_s2 + $0x40] sm:$0xff] }
 0x176   : > { %v959_v39 = vpop.xlane.xlu1 %958 }
 0x177   : > { %v2310_v9 = vmul.f32 0.00390625, %v959_v39 }
 0x178   : > { %v965_v15 = vpop.xlane.xlu0 %964  ;;  %v953_v26 = vpop.xlane.xlu2 %952 }
 0x179   : > { %1064 = vst.msk [vmem:[%s2275_s13 + $0x30] sm:$0xff] %vm1057_vm1, %v2310_v9  ;;  %v2318_v51 = vmul.f32 0.00390625, %v965_v15  ;;  %v2320_v10 = vmul.f32 0.00390625, %v953_v26  ;;  %v1080_v48 = vmul.f32 %v2310_v9, %v2310_v9  ;;  %v1025_v28 = vmul.f32 %v1009_v46, %v2310_v9 }
 0x17b   : > { %1066 = vst.msk [vmem:[%s2275_s13 + $0x40] sm:$0xff] %vm1057_vm1, %v2318_v51  ;;  %v1078_v32 = vmul.f32 %v2320_v10, %v2320_v10  ;;  %v1023_v11 = vmul.f32 %v1007_v36, %v2320_v10  ;;  %v1082_v21 = vmul.f32 %v2318_v51, %v2318_v51  ;;  %v1014_v36 = vld [vmem:[%s2545_s2 + $0x58] sm:$0xff] }
 0x17c   : > { %1062 = vst.msk [vmem:[%s2275_s13 + $0x20] sm:$0xff] %vm1057_vm1, %v2320_v10 }
 0x17d   : > { %v1093_v35 = vadd.f32 %v1092_v1, %v1078_v32  ;;  %v1038_v56 = vadd.f32 %v1037_v45, %v1023_v11  ;;  %v1027_v1 = vmul.f32 %v1011_v14, %v2318_v51  ;;  %v1012_v32 = vld [vmem:[%s2545_s2 + $0x48] sm:$0xff]  ;;  %v1015_v11 = vld [vmem:[%s2545_s2 + $0x60] sm:$0xff] }
 0x17e   : > { %v968_v54 = vpop.xlane.xlu1 %967 }
 0x17f   : > { %v2343_v0 = vmul.f32 0.00390625, %v968_v54  ;;  %v1094_v43 = vadd.f32 %v1093_v35, %v1079_v62  ;;  %v1039_v33 = vadd.f32 %v1038_v56, %v1024_v53 }
 0x180   : > { %v974_v27 = vpop.xlane.xlu0 %973 }
 0x181   : > { %1067 = vst.msk [vmem:[%s2275_s13 + $0x48] sm:$0xff] %vm1057_vm1, %v2343_v0  ;;  %v2351_v38 = vmul.f32 0.00390625, %v974_v27  ;;  %v1095_v44 = vadd.f32 %v1094_v43, %v1080_v48  ;;  %v1083_v49 = vmul.f32 %v2343_v0, %v2343_v0  ;;  %v1040_v59 = vadd.f32 %v1039_v33, %v1025_v28 }
 0x182   : > { %v962_v57 = vpop.xlane.xlu2 %961  ;;  %v1028_v18 = vmul.f32 %v1012_v32, %v2343_v0 }
 0x183   : > { %v2357_v17 = vmul.f32 0.00390625, %v962_v57  ;;  %1069 = vst.msk [vmem:[%s2275_s13 + $0x58] sm:$0xff] %vm1057_vm1, %v2351_v38  ;;  %v1085_v13 = vmul.f32 %v2351_v38, %v2351_v38  ;;  %v1030_v24 = vmul.f32 %v1014_v36, %v2351_v38 }
 0x185   : > { %1065 = vst.msk [vmem:[%s2275_s13 + $0x38] sm:$0xff] %vm1057_vm1, %v2357_v17  ;;  %v1081_v4 = vmul.f32 %v2357_v17, %v2357_v17  ;;  %v1026_v42 = vmul.f32 %v1010_v47, %v2357_v17 }
 0x186   : > { %v977_v19 = vpop.xlane.xlu1 %976 }
 0x187   : > { %v1096_v3 = vadd.f32 %v1095_v44, %v1081_v4  ;;  %v2373_v41 = vmul.f32 0.00390625, %v977_v19  ;;  %v1041_v26 = vadd.f32 %v1040_v59, %v1026_v42  ;;  %v1016_v44 = vld [vmem:[%s2545_s2 + $0x68] sm:$0xff] }
 0x189   : > { %v983_v20 = vpop.xlane.xlu0 %982  ;;  %v1097_v58 = vadd.f32 %v1096_v3, %v1082_v21  ;;  %1070 = vst.msk [vmem:[%s2275_s13 + $0x60] sm:$0xff] %vm1057_vm1, %v2373_v41  ;;  %v1086_v50 = vmul.f32 %v2373_v41, %v2373_v41  ;;  %v1042_v62 = vadd.f32 %v1041_v26, %v1027_v1  ;;  %v1031_v19 = vmul.f32 %v1015_v11, %v2373_v41 }
 0x18a   : > { %v2378_v34 = vmul.f32 0.00390625, %v983_v20  ;;  %v1017_v20 = vld [vmem:[%s2545_s2 + $0x70] sm:$0xff] }
 0x18b   : > { %v1098_v60 = vadd.f32 %v1097_v58, %v1083_v49  ;;  %v1043_v57 = vadd.f32 %v1042_v62, %v1028_v18  ;;  %v1018_v49 = vld [vmem:[%s2545_s2 + $0x78] sm:$0xff] }
 0x18c   : > { %v971_v16 = vpop.xlane.xlu2 %970  ;;  %1072 = vst.msk [vmem:[%s2275_s13 + $0x70] sm:$0xff] %vm1057_vm1, %v2378_v34  ;;  %v1088_v54 = vmul.f32 %v2378_v34, %v2378_v34  ;;  %v1033_v46 = vmul.f32 %v1017_v20, %v2378_v34 }
 0x18d   : > { %v2392_v63 = vmul.f32 0.00390625, %v971_v16 }
 0x18e   : > { %v986_v30 = vpop.xlane.xlu1 %985 }
 0x18f   : > { %1068 = vst.msk [vmem:[%s2275_s13 + $0x50] sm:$0xff] %vm1057_vm1, %v2392_v63  ;;  %v1084_v61 = vmul.f32 %v2392_v63, %v2392_v63  ;;  %v2403_v39 = vmul.f32 0.00390625, %v986_v30  ;;  %v1029_v12 = vmul.f32 %v1013_v37, %v2392_v63 }
 0x191   : > { %v1099_v52 = vadd.f32 %v1098_v60, %v1084_v61  ;;  %1073 = vst.msk [vmem:[%s2275_s13 + $0x78] sm:$0xff] %vm1057_vm1, %v2403_v39  ;;  %v1089_v43 = vmul.f32 %v2403_v39, %v2403_v39  ;;  %v1044_v6 = vadd.f32 %v1043_v57, %v1029_v12  ;;  %v1034_v33 = vmul.f32 %v1018_v49, %v2403_v39 }
 0x193   : > { %v1100_v15 = vadd.f32 %v1099_v52, %v1085_v13  ;;  %v1045_v45 = vadd.f32 %v1044_v6, %v1030_v24 }
 0x194   : > { %v980_v5 = vpop.xlane.xlu2 %979 }
 0x195   : > { %v2413_v8 = vmul.f32 0.00390625, %v980_v5  ;;  %v1101_v35 = vadd.f32 %v1100_v15, %v1086_v50  ;;  %v1046_v56 = vadd.f32 %v1045_v45, %v1031_v19 }
 0x197   : > { %1071 = vst.msk [vmem:[%s2275_s13 + $0x68] sm:$0xff] %vm1057_vm1, %v2413_v8  ;;  %v1087_v31 = vmul.f32 %v2413_v8, %v2413_v8  ;;  %v1032_v22 = vmul.f32 %v1016_v44, %v2413_v8  ;;  %s2458_s13 = sshll.u32 %s1173_s7, 4  ;;  %s1178_s13 = int_to_ptr.hbm [resolvable:$true] %s2458_s13 }
 0x198   : > { %s1373_s15 = sshra.s32 %s1178_s13, 4  ;;  %s1374_s15 = int_to_ptr.hbm [resolvable:$true] %s1373_s15 }
 0x199   : > { %v1102_v7 = vadd.f32 %v1101_v35, %v1087_v31  ;;  %v1047_v53 = vadd.f32 %v1046_v56, %v1032_v22  ;;  %s1375_s16 = scalar_lea.hbm %s1374_s15, 1  ;;  %p1380_p0 = scmp.lt.s32.totalorder %s1374_s15, %s2546_s3 }
 0x19a   : > { %p1376_p11 = scmp.ne.s32.totalorder %s1374_s15, %s1375_s16  ;;  %p1381_p1 = scmp.lt.s32.totalorder %s1379_s10, %s1375_s16 }
 0x19b   : > { %v1103_v27 = vadd.f32 %v1102_v7, %v1088_v54  ;;  %v1048_v47 = vadd.f32 %v1047_v53, %v1033_v46 }
 0x19c   : > { %p1377_p12 = pnand %p1376_p11, %p1494_p5  ;;  %p1382_p2 = por %p1381_p1, %p1380_p0 }
 0x19d   : > { %v1104_v2 = vadd.f32 %v1103_v27, %v1089_v43  ;;  %v1049_v60 = vadd.f32 %v1048_v47, %v1034_v33 }
 0x19e   : > { %p1378_p13 = pneg %p1377_p12 }
 0x19f   : > { %v1105_v48 = vrot.slane %v1104_v2, 4  ;;  %v1050_v42 = vrot.slane %v1049_v60, 4 }
 0x1a0   : > { %p1383_p3 = pnand %p1382_p2, %p1378_p13 }
 0x1a1   : > { %v1106_v4 = vadd.f32 %v1105_v48, %v1104_v2  ;;  %v1051_v13 = vadd.f32 %v1050_v42, %v1049_v60 }
 0x1a3   : > { %v1107_v3 = vrot.slane %v1106_v4, 2  ;;  %v1052_v59 = vrot.slane %v1051_v13, 2 }
 0x1a5   : > { %v1108_v21 = vadd.f32 %v1107_v3, %v1106_v4  ;;  %v1053_v15 = vadd.f32 %v1052_v59, %v1051_v13 }
 0x1a7   : > { %v1109_v58 = vrot.slane %v1108_v21, 1  ;;  %v1054_v5 = vrot.slane %v1053_v15, 1 }
 0x1a9   : > { %v1110_v16 = vadd.f32 %v1109_v58, %v1108_v21  ;;  %v1055_v1 = vadd.f32 %v1054_v5, %v1053_v15 }
 0x1ab   : > { %1357 = vrsqrt.f32 %v1110_v16  ;;  %vm1117_vm3 = vweird.f32 %v1110_v16  ;;  %1056 = vst [vmem:[%s217_s8] sm:$0x1] %v1055_v1 }
 0x1b1   : > { %v1358_v61 = vpop.eup %1357 }
 0x1b2   : > { %v1112_v28 = vmul.f32 %v1358_v61, %v1110_v16  ;;  %vm1118_vm2 = vweird.f32 %v1358_v61 }
 0x1b3   : > { %vm1119_vm4 = vmor %vm1117_vm3, %vm1118_vm2 }
 0x1b4   : > { %v1113_v30 = vmul.f32 %v1358_v61, %v1112_v28 }
 0x1b6   : > { %v1114_v52 = vmul.f32 0.5, %v1113_v30 }
 0x1b8   : > { %v1115_v14 = vsub.f32 1.5, %v1114_v52 }
 0x1ba   : > { %v1116_v26 = vmul.f32 %v1358_v61, %v1115_v14 }
 0x1bc   : > { %v1120_v50 = vsel %vm1119_vm4, %v1358_v61, %v1116_v26 }
 0x1bd   : > { %v1121_v32 = vmin.f32 %v1120_v50, 1e+12 }
 0x1bf   : > { %v1122_v37 = vmul.f32 %v1121_v32, %v2282_v55  ;;  %v1123_v35 = vmul.f32 %v1121_v32, %v2287_v23  ;;  %v1124_v31 = vmul.f32 %v1121_v32, %v2277_v29 }
 0x1c0   : > { %1386 = shalt.err (!%p1383_p3)
}
 0x1c1   : > { %1306 = dma.vmem_to_hbm [thread:$0]  (%p1494_p5), %s1176_s9, 16, %s1178_s13, %s1155_s14   ;;  %v1125_v29 = vmul.f32 %v1121_v32, %v2296_v25  ;;  %v1126_v55 = vmul.f32 %v1121_v32, %v2320_v10  ;;  %1138 = vst.msk [vmem:[%s2466_s12] sm:$0xff] %vm1057_vm1, %v1122_v37  ;;  %v1127_v23 = vmul.f32 %v1121_v32, %v2294_v40  ;;  %v1128_v62 = vmul.f32 %v1121_v32, %v2310_v9 }
 0x1c2   : > { %1139 = vst.msk [vmem:[%s2466_s12 + $0x8] sm:$0xff] %vm1057_vm1, %v1123_v35  ;;  %v1129_v54 = vmul.f32 %v1121_v32, %v2357_v17  ;;  %v1130_v25 = vmul.f32 %v1121_v32, %v2318_v51  ;;  %v1131_v40 = vmul.f32 %v1121_v32, %v2343_v0  ;;  %v1132_v9 = vmul.f32 %v1121_v32, %v2392_v63 }
 0x1c3   : > { %1140 = vst.msk [vmem:[%s2466_s12 + $0x10] sm:$0xff] %vm1057_vm1, %v1124_v31  ;;  %v1133_v10 = vmul.f32 %v1121_v32, %v2351_v38  ;;  %v1134_v51 = vmul.f32 %v1121_v32, %v2373_v41  ;;  %v1135_v17 = vmul.f32 %v1121_v32, %v2413_v8  ;;  %v1136_v0 = vmul.f32 %v1121_v32, %v2378_v34 }
 0x1c4   : > { %1141 = vst.msk [vmem:[%s2466_s12 + $0x18] sm:$0xff] %vm1057_vm1, %v1125_v29  ;;  %v1137_v63 = vmul.f32 %v1121_v32, %v2403_v39 }
 0x1c5   : > { %1142 = vst.msk [vmem:[%s2466_s12 + $0x20] sm:$0xff] %vm1057_vm1, %v1126_v55 }
 0x1c6   : > { %1143 = vst.msk [vmem:[%s2466_s12 + $0x28] sm:$0xff] %vm1057_vm1, %v1127_v23 }
 0x1c7   : > { %1144 = vst.msk [vmem:[%s2466_s12 + $0x30] sm:$0xff] %vm1057_vm1, %v1128_v62 }
 0x1c8   : > { %1145 = vst.msk [vmem:[%s2466_s12 + $0x38] sm:$0xff] %vm1057_vm1, %v1129_v54 }
 0x1c9   : > { %1146 = vst.msk [vmem:[%s2466_s12 + $0x40] sm:$0xff] %vm1057_vm1, %v1130_v25 }
 0x1ca   : > { %1147 = vst.msk [vmem:[%s2466_s12 + $0x48] sm:$0xff] %vm1057_vm1, %v1131_v40 }
 0x1cb   : > { %1148 = vst.msk [vmem:[%s2466_s12 + $0x50] sm:$0xff] %vm1057_vm1, %v1132_v9 }
 0x1cc   : > { %1149 = vst.msk [vmem:[%s2466_s12 + $0x58] sm:$0xff] %vm1057_vm1, %v1133_v10 }
 0x1cd   : > { %1150 = vst.msk [vmem:[%s2466_s12 + $0x60] sm:$0xff] %vm1057_vm1, %v1134_v51 }
 0x1ce   : > { %1151 = vst.msk [vmem:[%s2466_s12 + $0x68] sm:$0xff] %vm1057_vm1, %v1135_v17 }
 0x1cf   : > { %1152 = vst.msk [vmem:[%s2466_s12 + $0x70] sm:$0xff] %vm1057_vm1, %v1136_v0 }
 0x1d0   : > { %1153 = vst.msk [vmem:[%s2466_s12 + $0x78] sm:$0xff] %vm1057_vm1, %v1137_v63 }
 0x1d1 PF: > { %p1312_p4 = scmp.ge.s32.totalorder %s1421_s21, 2  ;;  %s1195_s28 = sand.u32 1, %s1409_s18  }
 0x1d2   : > { %s1196_s25 = scalar_lea.sflag [#allocation3], %s1195_s28 }
 0x1d3   : > { %p1309_p5 = pnand %p1312_p4, %p1498_p6 }
 0x1d5   : > { %p1310_p7 = pneg %p1309_p5 }
 0x1d7   : > { %1404 = dma.done.wait (%p1310_p7), %s1196_s25, 16  }
 0x1d8   : > { %1406 = vsyncadd (%p1310_p7), %s1196_s25, 4294967280  ;;  %p16_p8 = scmp.ge.s32.totalorder %s1481_s24, 4   ;;  %s2643_s18 = smov %s1413_s19 }
 0x1d9   : > { %s2644_s19 = smov %s1417_s20  ;;  %s2645_s20 = smov %s1492_s27 }
 0x1da   : > { %s2646_s21 = smov %s1481_s24  ;;  %18 = sbr.rel (!%p16_p8) target bundleno = 3 (0x3), region = 94 }
 0x1df   :  { %1217 = vsyncpa [#allocation3], 1 }
 0x1e0   :  { %1219 = vsyncpa [#allocation3 + $0x1], 1 }

</bundles_post_ra>
